<compile_context>
chip_gen: v7x
topology: tpu7x:2x2x1
jax: 0.10.0
libtpu: 0.0.40
codegen_flags: <defaults>
</compile_context>

<pallas_src>
import functools

import jax
import jax.numpy as jnp
from jax import lax
from jax.experimental import pallas as pl
from jax.experimental.pallas import tpu as pltpu

EPS = 1e-5


# ------------- kernel 1: conv1 (1x1) + ReLU, per-batch BN1 partial stats -------------
def _k1_conv1(x_ref, w1_ref, b1_ref, a1_ref, s_ref, q_ref):
    x = x_ref[0]                                                     # [L, C] f32
    h = jnp.dot(x.astype(jnp.bfloat16), w1_ref[...],
                preferred_element_type=jnp.float32) + b1_ref[...]
    h = jnp.maximum(h, 0.0)
    a1_ref[0] = h
    s_ref[0] = jnp.sum(h, axis=0, keepdims=True)
    q_ref[0] = jnp.sum(h * h, axis=0, keepdims=True)


# --------- kernel 2: BN1 fold + dilated conv2 (fused taps) + ReLU, stats -------------
def _k2_conv2(a1_ref, sc_ref, sh_ref, w2_ref, b2_ref, a2_ref, s_ref, q_ref,
              *, K, dilation, pad, L, C):
    h = a1_ref[0] * sc_ref[...] + sh_ref[...]                        # BN1 folded FMA
    if pad > 0:
        zp = jnp.zeros((pad, C), jnp.float32)
        hp = jnp.concatenate([zp, h, zp], axis=0)                    # [L + 2*pad, C]
    else:
        hp = h
    # Gather the K dilated shifts along the lane axis -> one K*C-long contraction
    # instead of K separate underfilled [L,C]x[C,C] matmuls.
    taps = [hp[k * dilation:k * dilation + L, :] for k in range(K)]
    cat = taps[0] if K == 1 else jnp.concatenate(taps, axis=-1)      # [L, K*C]
    z = jnp.dot(cat.astype(jnp.bfloat16), w2_ref[...],
                preferred_element_type=jnp.float32) + b2_ref[...]
    z = jnp.maximum(z, 0.0)
    a2_ref[0] = z
    s_ref[0] = jnp.sum(z, axis=0, keepdims=True)
    q_ref[0] = jnp.sum(z * z, axis=0, keepdims=True)


# ------------- kernel 3: BN2 fold + conv3 (1x1), per-batch BN3 partial stats ---------
def _k3_conv3(a2_ref, sc_ref, sh_ref, w3_ref, b3_ref, a3_ref, s_ref, q_ref):
    h = a2_ref[0] * sc_ref[...] + sh_ref[...]
    z = jnp.dot(h.astype(jnp.bfloat16), w3_ref[...],
                preferred_element_type=jnp.float32) + b3_ref[...]    # no ReLU here
    a3_ref[0] = z
    s_ref[0] = jnp.sum(z, axis=0, keepdims=True)
    q_ref[0] = jnp.sum(z * z, axis=0, keepdims=True)


# ------------- kernel 4: BN3 fold + residual + SE gate (pool/FCs per batch) ----------
def _k4_res_se(a3_ref, x_ref, sc_ref, sh_ref,
               wse1_ref, bse1_ref, wse2_ref, bse2_ref, out_ref):
    out_pre = a3_ref[0] * sc_ref[...] + sh_ref[...] + x_ref[0]       # [L, C]
    s = jnp.mean(out_pre, axis=0, keepdims=True)                     # [1, C] pool over L
    z = jnp.dot(s.astype(jnp.bfloat16), wse1_ref[...],
                preferred_element_type=jnp.float32) + bse1_ref[...]
    z = jnp.maximum(z, 0.0)                                          # [1, R]
    g = jnp.dot(z.astype(jnp.bfloat16), wse2_ref[...],
                preferred_element_type=jnp.float32) + bse2_ref[...]
    g = jax.nn.sigmoid(g)                                            # EUP transcendental
    out_ref[0] = out_pre * g                                         # lane-dense store


def _bn_fold(s_part, q_part, gamma, beta, n):
    """Finalize BN train-mode stats (f32) and fold into per-channel scale/shift."""
    s = jnp.sum(s_part, axis=0)                                      # [1, C]
    q = jnp.sum(q_part, axis=0)
    mean = s / n
    var = q / n - mean * mean                                        # biased variance
    scale = gamma * lax.rsqrt(var + EPS)
    shift = beta - mean * scale
    return scale, shift


def bottleneck_forward(x_ncl, params, *, kernel_size, dilation):
    """x_ncl: [B, C, L] float32 (PyTorch Conv1d layout)."""
    B, C, L = x_ncl.shape
    K = kernel_size
    pad = dilation * (K - 1) // 2

    # NCL -> NLC so channels land on the 128-wide lane axis for every pass.
    # TODO(synk): fold these two layout transposes into K1/K4 (NCL-side dot_general /
    # in-kernel transpose) to save one extra HBM round trip each.
    x = jnp.transpose(x_ncl, (0, 2, 1)).astype(jnp.float32)          # [B, L, C]

    bf = jnp.bfloat16
    w1 = params["w1"].astype(bf)
    w2 = params["w2"].reshape(K * C, C).astype(bf)                   # taps fused
    w3 = params["w3"].astype(bf)
    wse1 = params["wse1"].astype(bf)
    wse2 = params["wse2"].astype(bf)

    n = float(B * L)
    row = pl.BlockSpec((1, L, C), lambda b: (b, 0, 0))               # per-batch tile
    stat = pl.BlockSpec((1, 1, C), lambda b: (b, 0, 0))              # per-batch stats

    def rep(arr):  # small weight/param resident (same block) every grid step
        nd = arr.ndim
        return pl.BlockSpec(arr.shape, lambda b: (0,) * nd)

    act = jax.ShapeDtypeStruct((B, L, C), jnp.float32)
    st = jax.ShapeDtypeStruct((B, 1, C), jnp.float32)
    cp = pltpu.CompilerParams(dimension_semantics=("parallel",),
                              vmem_limit_bytes=48 * 1024 * 1024)

    # ---- pass 1: conv1 + ReLU ----------------------------------------------------
    a1, s1, q1 = pl.pallas_call(
        _k1_conv1, grid=(B,),
        in_specs=[row, rep(w1), rep(params["b1"])],
        out_specs=[row, stat, stat],
        out_shape=[act, st, st],
        compiler_params=cp,
    )(x, w1, params["b1"])
    sc1, sh1 = _bn_fold(s1, q1, params["g1"], params["be1"], n)

    # ---- pass 2: BN1 + dilated conv2 + ReLU --------------------------------------
    k2 = functools.partial(_k2_conv2, K=K, dilation=dilation, pad=pad, L=L, C=C)
    a2, s2, q2 = pl.pallas_call(
        k2, grid=(B,),
        in_specs=[row, rep(sc1), rep(sh1), rep(w2), rep(params["b2"])],
        out_specs=[row, stat, stat],
        out_shape=[act, st, st],
        compiler_params=cp,
    )(a1, sc1, sh1, w2, params["b2"])
    sc2, sh2 = _bn_fold(s2, q2, params["g2"], params["be2"], n)

    # ---- pass 3: BN2 + conv3 ------------------------------------------------------
    a3, s3, q3 = pl.pallas_call(
        _k3_conv3, grid=(B,),
        in_specs=[row, rep(sc2), rep(sh2), rep(w3), rep(params["b3"])],
        out_specs=[row, stat, stat],
        out_shape=[act, st, st],
        compiler_params=cp,
    )(a2, sc2, sh2, w3, params["b3"])
    sc3, sh3 = _bn_fold(s3, q3, params["g3"], params["be3"], n)

    # ---- pass 4: BN3 + residual + SE gate -----------------------------------------
    out_nlc = pl.pallas_call(
        _k4_res_se, grid=(B,),
        in_specs=[row, row, rep(sc3), rep(sh3),
                  rep(wse1), rep(params["bse1"]), rep(wse2), rep(params["bse2"])],
        out_specs=row,
        out_shape=act,
        compiler_params=cp,
    )(a3, x, sc3, sh3, wse1, params["bse1"], wse2, params["bse2"])

    return jnp.transpose(out_nlc, (0, 2, 1))                         # back to [B, C, L]


def init_params(key, C, K, bottleneck=128):
    """Deterministic PyTorch-like init. Weights stored as [in, out] for x @ W."""
    ks = jax.random.split(key, 10)

    def u(k, shape, fan_in):
        bound = 1.0 / (fan_in ** 0.5)
        return jax.random.uniform(k, shape, jnp.float32, -bound, bound)

    ones = lambda m: jnp.ones((1, m), jnp.float32)
    zeros = lambda m: jnp.zeros((1, m), jnp.float32)
    return dict(
        # conv1 (1x1): weight [in, out], bias [1, out]
        w1=u(ks[0], (C, C), C), b1=u(ks[1], (1, C), C),
        # conv2 (K taps, dilated): weight [K, in, out]
        w2=u(ks[2], (K, C, C), C * K), b2=u(ks[3], (1, C), C * K),
        # conv3 (1x1)
        w3=u(ks[4], (C, C), C), b3=u(ks[5], (1, C), C),
        # BatchNorm affine params (PyTorch defaults: gamma=1, beta=0)
        g1=ones(C), be1=zeros(C),
        g2=ones(C), be2=zeros(C),
        g3=ones(C), be3=zeros(C),
        # SE: Conv1d(C, bottleneck, 1) and Conv1d(bottleneck, C, 1)
        wse1=u(ks[6], (C, bottleneck), C), bse1=u(ks[7], (1, bottleneck), C),
        wse2=u(ks[8], (bottleneck, C), bottleneck), bse2=u(ks[9], (1, C), bottleneck),
    )


if __name__ == "__main__":
    # Small but layout-friendly shapes: C lane-dense (multiple of 128), L multiple of 8.
    B, C, L = 2, 128, 32
    kernel_size, dilation = 3, 2          # "same" padding = dilation*(K-1)//2 = 2

    key = jax.random.PRNGKey(0)
    kx, kp = jax.random.split(key)
    x = jax.random.normal(kx, (B, C, L), jnp.float32)       # NCL like PyTorch
    params = init_params(kp, C, kernel_size, bottleneck=128)

    fwd = jax.jit(functools.partial(bottleneck_forward,
                                    kernel_size=kernel_size, dilation=dilation))
    out = fwd(x, params)
    jax.block_until_ready(out)
    assert out.shape == (B, C, L) and out.dtype == jnp.float32
    print("KERNEL_OK")
</pallas_src>

<mosaic_0001>
module attributes {stable_mosaic.version = 11 : i64} {
  func.func @_k1_conv1(%arg0: i32, %arg1: memref<1x32x128xf32, #tpu.memory_space<vmem>>, %arg2: memref<128x128xbf16, #tpu.memory_space<vmem>>, %arg3: memref<1x128xf32, #tpu.memory_space<vmem>>, %arg4: memref<1x32x128xf32, #tpu.memory_space<vmem>>, %arg5: memref<1x1x128xf32, #tpu.memory_space<vmem>>, %arg6: memref<1x1x128xf32, #tpu.memory_space<vmem>>) attributes {dimension_semantics = [#tpu.dimension_semantics<parallel>], iteration_bounds = array<i64: 2>, scalar_prefetch = 0 : i64, scratch_operands = 0 : i64, tpu.core_type = #tpu.core_type<tc>, window_params = [{transform_indices = @transform_0, window_bounds = array<i64: 1, 32, 128>}, {pipeline_mode = #tpu.pipeline_mode<synchronous>, transform_indices = @transform_1, window_bounds = array<i64: 128, 128>}, {pipeline_mode = #tpu.pipeline_mode<synchronous>, transform_indices = @transform_2, window_bounds = array<i64: 1, 128>}, {transform_indices = @transform_3, window_bounds = array<i64: 1, 32, 128>}, {transform_indices = @transform_4, window_bounds = array<i64: 1, 1, 128>}, {transform_indices = @transform_5, window_bounds = array<i64: 1, 1, 128>}]} {
    %c0 = arith.constant 0 : index
    %c0_0 = arith.constant 0 : index
    %c0_1 = arith.constant 0 : index
    %0 = vector.load %arg1[%c0, %c0_0, %c0_1] : memref<1x32x128xf32, #tpu.memory_space<vmem>>, vector<1x32x128xf32>
    %1 = vector.shape_cast %0 : vector<1x32x128xf32> to vector<32x128xf32>
    %2 = arith.truncf %1 : vector<32x128xf32> to vector<32x128xbf16>
    %c0_2 = arith.constant 0 : index
    %c0_3 = arith.constant 0 : index
    %3 = vector.load %arg2[%c0_2, %c0_3] : memref<128x128xbf16, #tpu.memory_space<vmem>>, vector<128x128xbf16>
    %cst = arith.constant dense<0.000000e+00> : vector<32x128xf32>
    %4 = tpu.matmul %2, %3, %cst {dimension_numbers = #tpu.dot_dimension_numbers<[1], [0], [0], [1], [0, 0, 1, 1], [], []>} : vector<32x128xbf16>, vector<128x128xbf16>, vector<32x128xf32> -> vector<32x128xf32>
    %c0_4 = arith.constant 0 : index
    %c0_5 = arith.constant 0 : index
    %5 = vector.load %arg3[%c0_4, %c0_5] : memref<1x128xf32, #tpu.memory_space<vmem>>, vector<1x128xf32>
    %6 = vector.broadcast %5 : vector<1x128xf32> to vector<32x128xf32>
    %7 = arith.addf %4, %6 : vector<32x128xf32>
    %cst_6 = arith.constant 0.000000e+00 : f32
    %8 = vector.broadcast %cst_6 : f32 to vector<32x128xf32>
    %9 = arith.maximumf %7, %8 : vector<32x128xf32>
    %c0_7 = arith.constant 0 : index
    %c0_8 = arith.constant 0 : index
    %c0_9 = arith.constant 0 : index
    %10 = vector.load %arg4[%c0_7, %c0_8, %c0_9] : memref<1x32x128xf32, #tpu.memory_space<vmem>>, vector<1x32x128xf32>
    %11 = vector.shape_cast %10 : vector<1x32x128xf32> to vector<32x128xf32>
    %12 = vector.shape_cast %9 : vector<32x128xf32> to vector<1x32x128xf32>
    tpu.vector_store %arg4[%c0_7, %c0_8, %c0_9], %12 {strides = array<i32>} : memref<1x32x128xf32, #tpu.memory_space<vmem>>, vector<1x32x128xf32>,
    %cst_10 = arith.constant dense<0.000000e+00> : vector<128xf32>
    %13 = vector.multi_reduction <add>, %9, %cst_10 [0] : vector<32x128xf32> to vector<128xf32>
    %14 = vector.shape_cast %13 : vector<128xf32> to vector<1x128xf32>
    %c0_11 = arith.constant 0 : index
    %c0_12 = arith.constant 0 : index
    %c0_13 = arith.constant 0 : index
    %15 = vector.load %arg5[%c0_11, %c0_12, %c0_13] : memref<1x1x128xf32, #tpu.memory_space<vmem>>, vector<1x1x128xf32>
    %16 = vector.shape_cast %15 : vector<1x1x128xf32> to vector<1x128xf32>
    %17 = vector.shape_cast %14 : vector<1x128xf32> to vector<1x1x128xf32>
    tpu.vector_store %arg5[%c0_11, %c0_12, %c0_13], %17 {strides = array<i32>} : memref<1x1x128xf32, #tpu.memory_space<vmem>>, vector<1x1x128xf32>,
    %18 = arith.mulf %9, %9 : vector<32x128xf32>
    %cst_14 = arith.constant dense<0.000000e+00> : vector<128xf32>
    %19 = vector.multi_reduction <add>, %18, %cst_14 [0] : vector<32x128xf32> to vector<128xf32>
    %20 = vector.shape_cast %19 : vector<128xf32> to vector<1x128xf32>
    %c0_15 = arith.constant 0 : index
    %c0_16 = arith.constant 0 : index
    %c0_17 = arith.constant 0 : index
    %21 = vector.load %arg6[%c0_15, %c0_16, %c0_17] : memref<1x1x128xf32, #tpu.memory_space<vmem>>, vector<1x1x128xf32>
    %22 = vector.shape_cast %21 : vector<1x1x128xf32> to vector<1x128xf32>
    %23 = vector.shape_cast %20 : vector<1x128xf32> to vector<1x1x128xf32>
    tpu.vector_store %arg6[%c0_15, %c0_16, %c0_17], %23 {strides = array<i32>} : memref<1x1x128xf32, #tpu.memory_space<vmem>>, vector<1x1x128xf32>,
    return
  }
  func.func @transform_0(%arg0: i32) -> (i32, i32, i32) {
    %c0_i32 = arith.constant 0 : i32
    %c0_i32_0 = arith.constant 0 : i32
    %c0_i32_1 = arith.constant 0 : i32
    return %arg0, %c0_i32, %c0_i32_0 : i32, i32, i32
  }
  func.func @transform_1(%arg0: i32) -> (i32, i32) {
    %c0_i32 = arith.constant 0 : i32
    %c0_i32_0 = arith.constant 0 : i32
    %c0_i32_1 = arith.constant 0 : i32
    return %c0_i32, %c0_i32_0 : i32, i32
  }
  func.func @transform_2(%arg0: i32) -> (i32, i32) {
    %c0_i32 = arith.constant 0 : i32
    %c0_i32_0 = arith.constant 0 : i32
    %c0_i32_1 = arith.constant 0 : i32
    return %c0_i32, %c0_i32_0 : i32, i32
  }
  func.func @transform_3(%arg0: i32) -> (i32, i32, i32) {
    %c0_i32 = arith.constant 0 : i32
    %c0_i32_0 = arith.constant 0 : i32
    %c0_i32_1 = arith.constant 0 : i32
    return %arg0, %c0_i32, %c0_i32_0 : i32, i32, i32
  }
  func.func @transform_4(%arg0: i32) -> (i32, i32, i32) {
    %c0_i32 = arith.constant 0 : i32
    %c0_i32_0 = arith.constant 0 : i32
    %c0_i32_1 = arith.constant 0 : i32
    return %arg0, %c0_i32, %c0_i32_0 : i32, i32, i32
  }
  func.func @transform_5(%arg0: i32) -> (i32, i32, i32) {
    %c0_i32 = arith.constant 0 : i32
    %c0_i32_0 = arith.constant 0 : i32
    %c0_i32_1 = arith.constant 0 : i32
    return %arg0, %c0_i32, %c0_i32_0 : i32, i32, i32
  }
}

module attributes {stable_mosaic.version = 11 : i64} {
  func.func @_k3_conv3(%arg0: i32, %arg1: memref<1x32x128xf32, #tpu.memory_space<vmem>>, %arg2: memref<1x128xf32, #tpu.memory_space<vmem>>, %arg3: memref<1x128xf32, #tpu.memory_space<vmem>>, %arg4: memref<128x128xbf16, #tpu.memory_space<vmem>>, %arg5: memref<1x128xf32, #tpu.memory_space<vmem>>, %arg6: memref<1x32x128xf32, #tpu.memory_space<vmem>>, %arg7: memref<1x1x128xf32, #tpu.memory_space<vmem>>, %arg8: memref<1x1x128xf32, #tpu.memory_space<vmem>>) attributes {dimension_semantics = [#tpu.dimension_semantics<parallel>], iteration_bounds = array<i64: 2>, scalar_prefetch = 0 : i64, scratch_operands = 0 : i64, tpu.core_type = #tpu.core_type<tc>, window_params = [{transform_indices = @transform_0, window_bounds = array<i64: 1, 32, 128>}, {pipeline_mode = #tpu.pipeline_mode<synchronous>, transform_indices = @transform_1, window_bounds = array<i64: 1, 128>}, {pipeline_mode = #tpu.pipeline_mode<synchronous>, transform_indices = @transform_2, window_bounds = array<i64: 1, 128>}, {pipeline_mode = #tpu.pipeline_mode<synchronous>, transform_indices = @transform_3, window_bounds = array<i64: 128, 128>}, {pipeline_mode = #tpu.pipeline_mode<synchronous>, transform_indices = @transform_4, window_bounds = array<i64: 1, 128>}, {transform_indices = @transform_5, window_bounds = array<i64: 1, 32, 128>}, {transform_indices = @transform_6, window_bounds = array<i64: 1, 1, 128>}, {transform_indices = @transform_7, window_bounds = array<i64: 1, 1, 128>}]} {
    %c0 = arith.constant 0 : index
    %c0_0 = arith.constant 0 : index
    %c0_1 = arith.constant 0 : index
    %0 = vector.load %arg1[%c0, %c0_0, %c0_1] : memref<1x32x128xf32, #tpu.memory_space<vmem>>, vector<1x32x128xf32>
    %1 = vector.shape_cast %0 : vector<1x32x128xf32> to vector<32x128xf32>
    %c0_2 = arith.constant 0 : index
    %c0_3 = arith.constant 0 : index
    %2 = vector.load %arg2[%c0_2, %c0_3] : memref<1x128xf32, #tpu.memory_space<vmem>>, vector<1x128xf32>
    %3 = vector.broadcast %2 : vector<1x128xf32> to vector<32x128xf32>
    %4 = arith.mulf %1, %3 : vector<32x128xf32>
    %c0_4 = arith.constant 0 : index
    %c0_5 = arith.constant 0 : index
    %5 = vector.load %arg3[%c0_4, %c0_5] : memref<1x128xf32, #tpu.memory_space<vmem>>, vector<1x128xf32>
    %6 = vector.broadcast %5 : vector<1x128xf32> to vector<32x128xf32>
    %7 = arith.addf %4, %6 : vector<32x128xf32>
    %8 = arith.truncf %7 : vector<32x128xf32> to vector<32x128xbf16>
    %c0_6 = arith.constant 0 : index
    %c0_7 = arith.constant 0 : index
    %9 = vector.load %arg4[%c0_6, %c0_7] : memref<128x128xbf16, #tpu.memory_space<vmem>>, vector<128x128xbf16>
    %cst = arith.constant dense<0.000000e+00> : vector<32x128xf32>
    %10 = tpu.matmul %8, %9, %cst {dimension_numbers = #tpu.dot_dimension_numbers<[1], [0], [0], [1], [0, 0, 1, 1], [], []>} : vector<32x128xbf16>, vector<128x128xbf16>, vector<32x128xf32> -> vector<32x128xf32>
    %c0_8 = arith.constant 0 : index
    %c0_9 = arith.constant 0 : index
    %11 = vector.load %arg5[%c0_8, %c0_9] : memref<1x128xf32, #tpu.memory_space<vmem>>, vector<1x128xf32>
    %12 = vector.broadcast %11 : vector<1x128xf32> to vector<32x128xf32>
    %13 = arith.addf %10, %12 : vector<32x128xf32>
    %c0_10 = arith.constant 0 : index
    %c0_11 = arith.constant 0 : index
    %c0_12 = arith.constant 0 : index
    %14 = vector.load %arg6[%c0_10, %c0_11, %c0_12] : memref<1x32x128xf32, #tpu.memory_space<vmem>>, vector<1x32x128xf32>
    %15 = vector.shape_cast %14 : vector<1x32x128xf32> to vector<32x128xf32>
    %16 = vector.shape_cast %13 : vector<32x128xf32> to vector<1x32x128xf32>
    tpu.vector_store %arg6[%c0_10, %c0_11, %c0_12], %16 {strides = array<i32>} : memref<1x32x128xf32, #tpu.memory_space<vmem>>, vector<1x32x128xf32>,
    %cst_13 = arith.constant dense<0.000000e+00> : vector<128xf32>
    %17 = vector.multi_reduction <add>, %13, %cst_13 [0] : vector<32x128xf32> to vector<128xf32>
    %18 = vector.shape_cast %17 : vector<128xf32> to vector<1x128xf32>
    %c0_14 = arith.constant 0 : index
    %c0_15 = arith.constant 0 : index
    %c0_16 = arith.constant 0 : index
    %19 = vector.load %arg7[%c0_14, %c0_15, %c0_16] : memref<1x1x128xf32, #tpu.memory_space<vmem>>, vector<1x1x128xf32>
    %20 = vector.shape_cast %19 : vector<1x1x128xf32> to vector<1x128xf32>
    %21 = vector.shape_cast %18 : vector<1x128xf32> to vector<1x1x128xf32>
    tpu.vector_store %arg7[%c0_14, %c0_15, %c0_16], %21 {strides = array<i32>} : memref<1x1x128xf32, #tpu.memory_space<vmem>>, vector<1x1x128xf32>,
    %22 = arith.mulf %13, %13 : vector<32x128xf32>
    %cst_17 = arith.constant dense<0.000000e+00> : vector<128xf32>
    %23 = vector.multi_reduction <add>, %22, %cst_17 [0] : vector<32x128xf32> to vector<128xf32>
    %24 = vector.shape_cast %23 : vector<128xf32> to vector<1x128xf32>
    %c0_18 = arith.constant 0 : index
    %c0_19 = arith.constant 0 : index
    %c0_20 = arith.constant 0 : index
    %25 = vector.load %arg8[%c0_18, %c0_19, %c0_20] : memref<1x1x128xf32, #tpu.memory_space<vmem>>, vector<1x1x128xf32>
    %26 = vector.shape_cast %25 : vector<1x1x128xf32> to vector<1x128xf32>
    %27 = vector.shape_cast %24 : vector<1x128xf32> to vector<1x1x128xf32>
    tpu.vector_store %arg8[%c0_18, %c0_19, %c0_20], %27 {strides = array<i32>} : memref<1x1x128xf32, #tpu.memory_space<vmem>>, vector<1x1x128xf32>,
    return
  }
  func.func @transform_0(%arg0: i32) -> (i32, i32, i32) {
    %c0_i32 = arith.constant 0 : i32
    %c0_i32_0 = arith.constant 0 : i32
    %c0_i32_1 = arith.constant 0 : i32
    return %arg0, %c0_i32, %c0_i32_0 : i32, i32, i32
  }
  func.func @transform_1(%arg0: i32) -> (i32, i32) {
    %c0_i32 = arith.constant 0 : i32
    %c0_i32_0 = arith.constant 0 : i32
    %c0_i32_1 = arith.constant 0 : i32
    return %c0_i32, %c0_i32_0 : i32, i32
  }
  func.func @transform_2(%arg0: i32) -> (i32, i32) {
    %c0_i32 = arith.constant 0 : i32
    %c0_i32_0 = arith.constant 0 : i32
    %c0_i32_1 = arith.constant 0 : i32
    return %c0_i32, %c0_i32_0 : i32, i32
  }
  func.func @transform_3(%arg0: i32) -> (i32, i32) {
    %c0_i32 = arith.constant 0 : i32
    %c0_i32_0 = arith.constant 0 : i32
    %c0_i32_1 = arith.constant 0 : i32
    return %c0_i32, %c0_i32_0 : i32, i32
  }
  func.func @transform_4(%arg0: i32) -> (i32, i32) {
    %c0_i32 = arith.constant 0 : i32
    %c0_i32_0 = arith.constant 0 : i32
    %c0_i32_1 = arith.constant 0 : i32
    return %c0_i32, %c0_i32_0 : i32, i32
  }
  func.func @transform_5(%arg0: i32) -> (i32, i32, i32) {
    %c0_i32 = arith.constant 0 : i32
    %c0_i32_0 = arith.constant 0 : i32
    %c0_i32_1 = arith.constant 0 : i32
    return %arg0, %c0_i32, %c0_i32_0 : i32, i32, i32
  }
  func.func @transform_6(%arg0: i32) -> (i32, i32, i32) {
    %c0_i32 = arith.constant 0 : i32
    %c0_i32_0 = arith.constant 0 : i32
    %c0_i32_1 = arith.constant 0 : i32
    return %arg0, %c0_i32, %c0_i32_0 : i32, i32, i32
  }
  func.func @transform_7(%arg0: i32) -> (i32, i32, i32) {
    %c0_i32 = arith.constant 0 : i32
    %c0_i32_0 = arith.constant 0 : i32
    %c0_i32_1 = arith.constant 0 : i32
    return %arg0, %c0_i32, %c0_i32_0 : i32, i32, i32
  }
}

module attributes {stable_mosaic.version = 11 : i64} {
  func.func @_k2_conv2(%arg0: i32, %arg1: memref<1x32x128xf32, #tpu.memory_space<vmem>>, %arg2: memref<1x128xf32, #tpu.memory_space<vmem>>, %arg3: memref<1x128xf32, #tpu.memory_space<vmem>>, %arg4: memref<384x128xbf16, #tpu.memory_space<vmem>>, %arg5: memref<1x128xf32, #tpu.memory_space<vmem>>, %arg6: memref<1x32x128xf32, #tpu.memory_space<vmem>>, %arg7: memref<1x1x128xf32, #tpu.memory_space<vmem>>, %arg8: memref<1x1x128xf32, #tpu.memory_space<vmem>>) attributes {dimension_semantics = [#tpu.dimension_semantics<parallel>], iteration_bounds = array<i64: 2>, scalar_prefetch = 0 : i64, scratch_operands = 0 : i64, tpu.core_type = #tpu.core_type<tc>, window_params = [{transform_indices = @transform_0, window_bounds = array<i64: 1, 32, 128>}, {pipeline_mode = #tpu.pipeline_mode<synchronous>, transform_indices = @transform_1, window_bounds = array<i64: 1, 128>}, {pipeline_mode = #tpu.pipeline_mode<synchronous>, transform_indices = @transform_2, window_bounds = array<i64: 1, 128>}, {pipeline_mode = #tpu.pipeline_mode<synchronous>, transform_indices = @transform_3, window_bounds = array<i64: 384, 128>}, {pipeline_mode = #tpu.pipeline_mode<synchronous>, transform_indices = @transform_4, window_bounds = array<i64: 1, 128>}, {transform_indices = @transform_5, window_bounds = array<i64: 1, 32, 128>}, {transform_indices = @transform_6, window_bounds = array<i64: 1, 1, 128>}, {transform_indices = @transform_7, window_bounds = array<i64: 1, 1, 128>}]} {
    %c0 = arith.constant 0 : index
    %c0_0 = arith.constant 0 : index
    %c0_1 = arith.constant 0 : index
    %0 = vector.load %arg1[%c0, %c0_0, %c0_1] : memref<1x32x128xf32, #tpu.memory_space<vmem>>, vector<1x32x128xf32>
    %1 = vector.shape_cast %0 : vector<1x32x128xf32> to vector<32x128xf32>
    %c0_2 = arith.constant 0 : index
    %c0_3 = arith.constant 0 : index
    %2 = vector.load %arg2[%c0_2, %c0_3] : memref<1x128xf32, #tpu.memory_space<vmem>>, vector<1x128xf32>
    %3 = vector.broadcast %2 : vector<1x128xf32> to vector<32x128xf32>
    %4 = arith.mulf %1, %3 : vector<32x128xf32>
    %c0_4 = arith.constant 0 : index
    %c0_5 = arith.constant 0 : index
    %5 = vector.load %arg3[%c0_4, %c0_5] : memref<1x128xf32, #tpu.memory_space<vmem>>, vector<1x128xf32>
    %6 = vector.broadcast %5 : vector<1x128xf32> to vector<32x128xf32>
    %7 = arith.addf %4, %6 : vector<32x128xf32>
    %cst = arith.constant 0.000000e+00 : f32
    %8 = vector.broadcast %cst : f32 to vector<2x128xf32>
    %9 = tpu.concatenate %8, %7, %8 in 0 : vector<2x128xf32>, vector<32x128xf32>, vector<2x128xf32> -> vector<36x128xf32>
    %10 = vector.extract_strided_slice %9 {offsets = [0, 0], sizes = [32, 128], strides = [1, 1]} : vector<36x128xf32> to vector<32x128xf32>
    %11 = vector.extract_strided_slice %9 {offsets = [2, 0], sizes = [32, 128], strides = [1, 1]} : vector<36x128xf32> to vector<32x128xf32>
    %12 = vector.extract_strided_slice %9 {offsets = [4, 0], sizes = [32, 128], strides = [1, 1]} : vector<36x128xf32> to vector<32x128xf32>
    %13 = tpu.concatenate %10, %11, %12 in 1 : vector<32x128xf32>, vector<32x128xf32>, vector<32x128xf32> -> vector<32x384xf32>
    %14 = arith.truncf %13 : vector<32x384xf32> to vector<32x384xbf16>
    %c0_6 = arith.constant 0 : index
    %c0_7 = arith.constant 0 : index
    %15 = vector.load %arg4[%c0_6, %c0_7] : memref<384x128xbf16, #tpu.memory_space<vmem>>, vector<384x128xbf16>
    %cst_8 = arith.constant dense<0.000000e+00> : vector<32x128xf32>
    %16 = tpu.matmul %14, %15, %cst_8 {dimension_numbers = #tpu.dot_dimension_numbers<[1], [0], [0], [1], [0, 0, 1, 1], [], []>} : vector<32x384xbf16>, vector<384x128xbf16>, vector<32x128xf32> -> vector<32x128xf32>
    %c0_9 = arith.constant 0 : index
    %c0_10 = arith.constant 0 : index
    %17 = vector.load %arg5[%c0_9, %c0_10] : memref<1x128xf32, #tpu.memory_space<vmem>>, vector<1x128xf32>
    %18 = vector.broadcast %17 : vector<1x128xf32> to vector<32x128xf32>
    %19 = arith.addf %16, %18 : vector<32x128xf32>
    %cst_11 = arith.constant 0.000000e+00 : f32
    %20 = vector.broadcast %cst_11 : f32 to vector<32x128xf32>
    %21 = arith.maximumf %19, %20 : vector<32x128xf32>
    %c0_12 = arith.constant 0 : index
    %c0_13 = arith.constant 0 : index
    %c0_14 = arith.constant 0 : index
    %22 = vector.load %arg6[%c0_12, %c0_13, %c0_14] : memref<1x32x128xf32, #tpu.memory_space<vmem>>, vector<1x32x128xf32>
    %23 = vector.shape_cast %22 : vector<1x32x128xf32> to vector<32x128xf32>
    %24 = vector.shape_cast %21 : vector<32x128xf32> to vector<1x32x128xf32>
    tpu.vector_store %arg6[%c0_12, %c0_13, %c0_14], %24 {strides = array<i32>} : memref<1x32x128xf32, #tpu.memory_space<vmem>>, vector<1x32x128xf32>,
    %cst_15 = arith.constant dense<0.000000e+00> : vector<128xf32>
    %25 = vector.multi_reduction <add>, %21, %cst_15 [0] : vector<32x128xf32> to vector<128xf32>
    %26 = vector.shape_cast %25 : vector<128xf32> to vector<1x128xf32>
    %c0_16 = arith.constant 0 : index
    %c0_17 = arith.constant 0 : index
    %c0_18 = arith.constant 0 : index
    %27 = vector.load %arg7[%c0_16, %c0_17, %c0_18] : memref<1x1x128xf32, #tpu.memory_space<vmem>>, vector<1x1x128xf32>
    %28 = vector.shape_cast %27 : vector<1x1x128xf32> to vector<1x128xf32>
    %29 = vector.shape_cast %26 : vector<1x128xf32> to vector<1x1x128xf32>
    tpu.vector_store %arg7[%c0_16, %c0_17, %c0_18], %29 {strides = array<i32>} : memref<1x1x128xf32, #tpu.memory_space<vmem>>, vector<1x1x128xf32>,
    %30 = arith.mulf %21, %21 : vector<32x128xf32>
    %cst_19 = arith.constant dense<0.000000e+00> : vector<128xf32>
    %31 = vector.multi_reduction <add>, %30, %cst_19 [0] : vector<32x128xf32> to vector<128xf32>
    %32 = vector.shape_cast %31 : vector<128xf32> to vector<1x128xf32>
    %c0_20 = arith.constant 0 : index
    %c0_21 = arith.constant 0 : index
    %c0_22 = arith.constant 0 : index
    %33 = vector.load %arg8[%c0_20, %c0_21, %c0_22] : memref<1x1x128xf32, #tpu.memory_space<vmem>>, vector<1x1x128xf32>
    %34 = vector.shape_cast %33 : vector<1x1x128xf32> to vector<1x128xf32>
    %35 = vector.shape_cast %32 : vector<1x128xf32> to vector<1x1x128xf32>
    tpu.vector_store %arg8[%c0_20, %c0_21, %c0_22], %35 {strides = array<i32>} : memref<1x1x128xf32, #tpu.memory_space<vmem>>, vector<1x1x128xf32>,
    return
  }
  func.func @transform_0(%arg0: i32) -> (i32, i32, i32) {
    %c0_i32 = arith.constant 0 : i32
    %c0_i32_0 = arith.constant 0 : i32
    %c0_i32_1 = arith.constant 0 : i32
    return %arg0, %c0_i32, %c0_i32_0 : i32, i32, i32
  }
  func.func @transform_1(%arg0: i32) -> (i32, i32) {
    %c0_i32 = arith.constant 0 : i32
    %c0_i32_0 = arith.constant 0 : i32
    %c0_i32_1 = arith.constant 0 : i32
    return %c0_i32, %c0_i32_0 : i32, i32
  }
  func.func @transform_2(%arg0: i32) -> (i32, i32) {
    %c0_i32 = arith.constant 0 : i32
    %c0_i32_0 = arith.constant 0 : i32
    %c0_i32_1 = arith.constant 0 : i32
    return %c0_i32, %c0_i32_0 : i32, i32
  }
  func.func @transform_3(%arg0: i32) -> (i32, i32) {
    %c0_i32 = arith.constant 0 : i32
    %c0_i32_0 = arith.constant 0 : i32
    %c0_i32_1 = arith.constant 0 : i32
    return %c0_i32, %c0_i32_0 : i32, i32
  }
  func.func @transform_4(%arg0: i32) -> (i32, i32) {
    %c0_i32 = arith.constant 0 : i32
    %c0_i32_0 = arith.constant 0 : i32
    %c0_i32_1 = arith.constant 0 : i32
    return %c0_i32, %c0_i32_0 : i32, i32
  }
  func.func @transform_5(%arg0: i32) -> (i32, i32, i32) {
    %c0_i32 = arith.constant 0 : i32
    %c0_i32_0 = arith.constant 0 : i32
    %c0_i32_1 = arith.constant 0 : i32
    return %arg0, %c0_i32, %c0_i32_0 : i32, i32, i32
  }
  func.func @transform_6(%arg0: i32) -> (i32, i32, i32) {
    %c0_i32 = arith.constant 0 : i32
    %c0_i32_0 = arith.constant 0 : i32
    %c0_i32_1 = arith.constant 0 : i32
    return %arg0, %c0_i32, %c0_i32_0 : i32, i32, i32
  }
  func.func @transform_7(%arg0: i32) -> (i32, i32, i32) {
    %c0_i32 = arith.constant 0 : i32
    %c0_i32_0 = arith.constant 0 : i32
    %c0_i32_1 = arith.constant 0 : i32
    return %arg0, %c0_i32, %c0_i32_0 : i32, i32, i32
  }
}

module attributes {stable_mosaic.version = 11 : i64} {
  func.func @_k4_res_se(%arg0: i32, %arg1: memref<1x32x128xf32, #tpu.memory_space<vmem>>, %arg2: memref<1x32x128xf32, #tpu.memory_space<vmem>>, %arg3: memref<1x128xf32, #tpu.memory_space<vmem>>, %arg4: memref<1x128xf32, #tpu.memory_space<vmem>>, %arg5: memref<128x128xbf16, #tpu.memory_space<vmem>>, %arg6: memref<1x128xf32, #tpu.memory_space<vmem>>, %arg7: memref<128x128xbf16, #tpu.memory_space<vmem>>, %arg8: memref<1x128xf32, #tpu.memory_space<vmem>>, %arg9: memref<1x32x128xf32, #tpu.memory_space<vmem>>) attributes {dimension_semantics = [#tpu.dimension_semantics<parallel>], iteration_bounds = array<i64: 2>, scalar_prefetch = 0 : i64, scratch_operands = 0 : i64, tpu.core_type = #tpu.core_type<tc>, window_params = [{transform_indices = @transform_0, window_bounds = array<i64: 1, 32, 128>}, {transform_indices = @transform_1, window_bounds = array<i64: 1, 32, 128>}, {pipeline_mode = #tpu.pipeline_mode<synchronous>, transform_indices = @transform_2, window_bounds = array<i64: 1, 128>}, {pipeline_mode = #tpu.pipeline_mode<synchronous>, transform_indices = @transform_3, window_bounds = array<i64: 1, 128>}, {pipeline_mode = #tpu.pipeline_mode<synchronous>, transform_indices = @transform_4, window_bounds = array<i64: 128, 128>}, {pipeline_mode = #tpu.pipeline_mode<synchronous>, transform_indices = @transform_5, window_bounds = array<i64: 1, 128>}, {pipeline_mode = #tpu.pipeline_mode<synchronous>, transform_indices = @transform_6, window_bounds = array<i64: 128, 128>}, {pipeline_mode = #tpu.pipeline_mode<synchronous>, transform_indices = @transform_7, window_bounds = array<i64: 1, 128>}, {transform_indices = @transform_8, window_bounds = array<i64: 1, 32, 128>}]} {
    %c0 = arith.constant 0 : index
    %c0_0 = arith.constant 0 : index
    %c0_1 = arith.constant 0 : index
    %0 = vector.load %arg1[%c0, %c0_0, %c0_1] : memref<1x32x128xf32, #tpu.memory_space<vmem>>, vector<1x32x128xf32>
    %1 = vector.shape_cast %0 : vector<1x32x128xf32> to vector<32x128xf32>
    %c0_2 = arith.constant 0 : index
    %c0_3 = arith.constant 0 : index
    %2 = vector.load %arg3[%c0_2, %c0_3] : memref<1x128xf32, #tpu.memory_space<vmem>>, vector<1x128xf32>
    %3 = vector.broadcast %2 : vector<1x128xf32> to vector<32x128xf32>
    %4 = arith.mulf %1, %3 : vector<32x128xf32>
    %c0_4 = arith.constant 0 : index
    %c0_5 = arith.constant 0 : index
    %5 = vector.load %arg4[%c0_4, %c0_5] : memref<1x128xf32, #tpu.memory_space<vmem>>, vector<1x128xf32>
    %6 = vector.broadcast %5 : vector<1x128xf32> to vector<32x128xf32>
    %7 = arith.addf %4, %6 : vector<32x128xf32>
    %c0_6 = arith.constant 0 : index
    %c0_7 = arith.constant 0 : index
    %c0_8 = arith.constant 0 : index
    %8 = vector.load %arg2[%c0_6, %c0_7, %c0_8] : memref<1x32x128xf32, #tpu.memory_space<vmem>>, vector<1x32x128xf32>
    %9 = vector.shape_cast %8 : vector<1x32x128xf32> to vector<32x128xf32>
    %10 = arith.addf %7, %9 : vector<32x128xf32>
    %cst = arith.constant dense<0.000000e+00> : vector<128xf32>
    %11 = vector.multi_reduction <add>, %10, %cst [0] : vector<32x128xf32> to vector<128xf32>
    %12 = vector.shape_cast %11 : vector<128xf32> to vector<1x128xf32>
    %cst_9 = arith.constant 3.200000e+01 : f32
    %13 = vector.broadcast %cst_9 : f32 to vector<1x128xf32>
    %14 = arith.divf %12, %13 : vector<1x128xf32>
    %15 = arith.truncf %14 : vector<1x128xf32> to vector<1x128xbf16>
    %c0_10 = arith.constant 0 : index
    %c0_11 = arith.constant 0 : index
    %16 = vector.load %arg5[%c0_10, %c0_11] : memref<128x128xbf16, #tpu.memory_space<vmem>>, vector<128x128xbf16>
    %cst_12 = arith.constant dense<0.000000e+00> : vector<1x128xf32>
    %17 = tpu.matmul %15, %16, %cst_12 {dimension_numbers = #tpu.dot_dimension_numbers<[1], [0], [0], [1], [0, 0, 1, 1], [], []>} : vector<1x128xbf16>, vector<128x128xbf16>, vector<1x128xf32> -> vector<1x128xf32>
    %c0_13 = arith.constant 0 : index
    %c0_14 = arith.constant 0 : index
    %18 = vector.load %arg6[%c0_13, %c0_14] : memref<1x128xf32, #tpu.memory_space<vmem>>, vector<1x128xf32>
    %19 = arith.addf %17, %18 : vector<1x128xf32>
    %cst_15 = arith.constant 0.000000e+00 : f32
    %20 = vector.broadcast %cst_15 : f32 to vector<1x128xf32>
    %21 = arith.maximumf %19, %20 : vector<1x128xf32>
    %22 = arith.truncf %21 : vector<1x128xf32> to vector<1x128xbf16>
    %c0_16 = arith.constant 0 : index
    %c0_17 = arith.constant 0 : index
    %23 = vector.load %arg7[%c0_16, %c0_17] : memref<128x128xbf16, #tpu.memory_space<vmem>>, vector<128x128xbf16>
    %cst_18 = arith.constant dense<0.000000e+00> : vector<1x128xf32>
    %24 = tpu.matmul %22, %23, %cst_18 {dimension_numbers = #tpu.dot_dimension_numbers<[1], [0], [0], [1], [0, 0, 1, 1], [], []>} : vector<1x128xbf16>, vector<128x128xbf16>, vector<1x128xf32> -> vector<1x128xf32>
    %c0_19 = arith.constant 0 : index
    %c0_20 = arith.constant 0 : index
    %25 = vector.load %arg8[%c0_19, %c0_20] : memref<1x128xf32, #tpu.memory_space<vmem>>, vector<1x128xf32>
    %26 = arith.addf %24, %25 : vector<1x128xf32>
    %27 = arith.negf %26 : vector<1x128xf32>
    %28 = math.exp %27 : vector<1x128xf32>
    %cst_21 = arith.constant 1.000000e+00 : f32
    %29 = vector.broadcast %cst_21 : f32 to vector<1x128xf32>
    %30 = arith.addf %29, %28 : vector<1x128xf32>
    %31 = arith.divf %29, %30 : vector<1x128xf32>
    %32 = vector.broadcast %31 : vector<1x128xf32> to vector<32x128xf32>
    %33 = arith.mulf %10, %32 : vector<32x128xf32>
    %c0_22 = arith.constant 0 : index
    %c0_23 = arith.constant 0 : index
    %c0_24 = arith.constant 0 : index
    %34 = vector.load %arg9[%c0_22, %c0_23, %c0_24] : memref<1x32x128xf32, #tpu.memory_space<vmem>>, vector<1x32x128xf32>
    %35 = vector.shape_cast %34 : vector<1x32x128xf32> to vector<32x128xf32>
    %36 = vector.shape_cast %33 : vector<32x128xf32> to vector<1x32x128xf32>
    tpu.vector_store %arg9[%c0_22, %c0_23, %c0_24], %36 {strides = array<i32>} : memref<1x32x128xf32, #tpu.memory_space<vmem>>, vector<1x32x128xf32>,
    return
  }
  func.func @transform_0(%arg0: i32) -> (i32, i32, i32) {
    %c0_i32 = arith.constant 0 : i32
    %c0_i32_0 = arith.constant 0 : i32
    %c0_i32_1 = arith.constant 0 : i32
    return %arg0, %c0_i32, %c0_i32_0 : i32, i32, i32
  }
  func.func @transform_1(%arg0: i32) -> (i32, i32, i32) {
    %c0_i32 = arith.constant 0 : i32
    %c0_i32_0 = arith.constant 0 : i32
    %c0_i32_1 = arith.constant 0 : i32
    return %arg0, %c0_i32, %c0_i32_0 : i32, i32, i32
  }
  func.func @transform_2(%arg0: i32) -> (i32, i32) {
    %c0_i32 = arith.constant 0 : i32
    %c0_i32_0 = arith.constant 0 : i32
    %c0_i32_1 = arith.constant 0 : i32
    return %c0_i32, %c0_i32_0 : i32, i32
  }
  func.func @transform_3(%arg0: i32) -> (i32, i32) {
    %c0_i32 = arith.constant 0 : i32
    %c0_i32_0 = arith.constant 0 : i32
    %c0_i32_1 = arith.constant 0 : i32
    return %c0_i32, %c0_i32_0 : i32, i32
  }
  func.func @transform_4(%arg0: i32) -> (i32, i32) {
    %c0_i32 = arith.constant 0 : i32
    %c0_i32_0 = arith.constant 0 : i32
    %c0_i32_1 = arith.constant 0 : i32
    return %c0_i32, %c0_i32_0 : i32, i32
  }
  func.func @transform_5(%arg0: i32) -> (i32, i32) {
    %c0_i32 = arith.constant 0 : i32
    %c0_i32_0 = arith.constant 0 : i32
    %c0_i32_1 = arith.constant 0 : i32
    return %c0_i32, %c0_i32_0 : i32, i32
  }
  func.func @transform_6(%arg0: i32) -> (i32, i32) {
    %c0_i32 = arith.constant 0 : i32
    %c0_i32_0 = arith.constant 0 : i32
    %c0_i32_1 = arith.constant 0 : i32
    return %c0_i32, %c0_i32_0 : i32, i32
  }
  func.func @transform_7(%arg0: i32) -> (i32, i32) {
    %c0_i32 = arith.constant 0 : i32
    %c0_i32_0 = arith.constant 0 : i32
    %c0_i32_1 = arith.constant 0 : i32
    return %c0_i32, %c0_i32_0 : i32, i32
  }
  func.func @transform_8(%arg0: i32) -> (i32, i32, i32) {
    %c0_i32 = arith.constant 0 : i32
    %c0_i32_0 = arith.constant 0 : i32
    %c0_i32_1 = arith.constant 0 : i32
    return %arg0, %c0_i32, %c0_i32_0 : i32, i32, i32
  }
}

</mosaic_0001>

<bundles_post_ra>
// kernel: bottleneck_forward.4
= control target key start
LH: loop header
LB: loop body
LE: loop exit
PB: predicated region body
PF: predicated region fallthrough
CT: control target
= control target key end

     0   :  { %11 = vsyncpa [#allocation3], 0  ;;  %s885_s0 = inlined_call_operand.hbm [shape: f32[2,32,128], index: 0, kind: input, shape index: {}]   ;;  %s886_s1 = inlined_call_operand.vmem [shape: bf16[128,128], index: 1, kind: input, shape index: {}]   ;;  %s887_s2 = inlined_call_operand.vmem [shape: f32[1,128], index: 2, kind: input, shape index: {}]   ;;  %s888_s3 = inlined_call_operand.vmem [shape: f32[2,32,128], index: 3, kind: output, shape index: {0}]   ;;  %s889_s4 = inlined_call_operand.vmem [shape: f32[2,1,128], index: 4, kind: output, shape index: {1}]   ;;  %s890_s5 = inlined_call_operand.vmem [shape: f32[2,1,128], index: 5, kind: output, shape index: {2}]  }
   0x1   :  { %13 = vsyncpa [#allocation3 + $0x1], 0  ;;  %s739_s18 = smov 0   ;;  %s741_s19 = smov 0  }
   0x2   :  { %s743_s20 = smov 0   ;;  %s745_s21 = smov 0  }
   0x3 LB: > { %s758_s22 = sadd.s32 4294967295, %s704_s21   ;;  %s761_s23 = sadd.s32 1, %s704_s21   ;;  %s704_s21 = sphi %s745_s21, %s897_s21   ;;  %s700_s20 = sphi %s743_s20, %s896_s20   ;;  %s696_s19 = sphi %s741_s19, %s895_s19   ;;  %s692_s18 = sphi %s739_s18, %s894_s18  }
   0x4   : > { %s23_s24 = ssub.s32 %s704_s21, %s761_s23  ;;  %s26_s25 = sadd.s32 1, %s700_s20 }
   0x5   : > { %p24_p0 = scmp.eq.s32.totalorder %s23_s24, 0  ;;  %p33_p1 = scmp.ne.s32.totalorder %s700_s20, %s696_s19 }
   0x6   : > { %p34_p2 = scmp.eq.s32.totalorder %s704_s21, 0  ;;  %p39_p3 = scmp.ne.s32.totalorder %s696_s19, %s692_s18 }
   0x7   : > { %s771_s26 = scalar_select %p24_p0, %s700_s20, %s26_s25  }
   0x8   : > { %p35_p4 = por %p34_p2, %p33_p1  ;;  %p40_p5 = scmp.eq.s32.totalorder %s758_s22, 0 }
   0x9   : > { %p597_p6 = scmp.lt.s32.totalorder %s704_s21, 2  ;;  %s189_s28 = sand.u32 1, %s700_s20  }
   0xa   : > { %p775_p7 = por %p40_p5, %p39_p3  ;;  %s541_s29 = sshll.u32 %s189_s28, 5 }
   0xb   : > { %s559_s30 = sshll.u32 %s704_s21, 9  ;;  %s193_s9 = scalar_lea.vmem [#allocation2], %s541_s29 }
   0xc   : > { %s784_s8 = scalar_lea.hbm %s885_s0, %s559_s30  ;;  %s200_s10 = sshll.u32 %s193_s9, 4  ;;  %s786_s10 = int_to_ptr.vmem [resolvable:$true] %s200_s10 }
   0xd   : > { %p788_p8 = pnand %p597_p6, %p35_p4  ;;  %s793_s12 = scalar_lea.sflag [#allocation3], %s189_s28 }
   0xe   : > { %s640_s13 = scalar_lea.hbm %s784_s8, 512  ;;  %s645_s16 = scalar_lea.hbm %s885_s0, 1024 }
   0xf   : > { %p641_p10 = scmp.ne.s32.totalorder %s784_s8, %s640_s13  ;;  %p642_p11 = pneg %p788_p8 }
  0x10   : > { %p646_p0 = scmp.lt.u32.totalorder %s784_s8, %s885_s0  ;;  %p647_p1 = scmp.lt.u32.totalorder %s645_s16, %s640_s13 }
  0x11   : > { %p643_p12 = pnand %p642_p11, %p641_p10  ;;  %p649_p3 = scmp.lt.u32.totalorder %s640_s13, %s784_s8 }
  0x12   : > { %p648_p2 = por %p647_p1, %p646_p0 }
  0x13   : > { %p644_p13 = pneg %p643_p12 }
  0x14   : > { %p650_p4 = por %p649_p3, %p648_p2 }
  0x16   : > { %p651_p5 = pnand %p650_p4, %p644_p13 }
  0x18   : > { %654 = shalt.err (!%p651_p5)
}
  0x19   : > { %s655_s24 = scalar_lea.vmem %s786_s10, 512  ;;  %s706_s25 = smov [#allocation2]  }
  0x1a   : > { %p656_p6 = scmp.ne.s32.totalorder %s786_s10, %s655_s24  ;;  %s660_s28 = sshll.u32 %s706_s25, 4  ;;  %s661_s28 = int_to_ptr.vmem [resolvable:$false] %s660_s28 }
  0x1b   : > { %s662_s29 = scalar_lea.vmem %s661_s28, 1024  ;;  %p663_p9 = scmp.lt.s32.totalorder %s786_s10, %s661_s28 }
  0x1c   : > { %p658_p10 = pnand %p656_p6, %p642_p11  ;;  %p664_p0 = scmp.lt.s32.totalorder %s662_s29, %s655_s24 }
  0x1e   : > { %p659_p12 = pneg %p658_p10  ;;  %p665_p1 = por %p664_p0, %p663_p9 }
  0x20   : > { %p666_p2 = pnand %p665_p1, %p659_p12 }
  0x22   : > { %669 = shalt.err (!%p666_p2)
}
  0x23   : > { %s707_s30 = smov 128   ;;  %s708_s6 = smov 8  }
  0x24   : > { %596 = dma.hbm_to_vmem [thread:$0]  (!%p788_p8), %s784_s8, 512, %s786_s10, %s793_s12, %s707_s30, %s707_s30, %s708_s6  }
  0x25   : > { %p208_p11 = scmp.lt.s32.totalorder %s704_s21, 3  ;;  %p893_p13 = scmp.ge.s32.totalorder %s704_s21, 1 }
  0x27   : > { %p209_p3 = pnand %p893_p13, %p208_p11 }
  0x28   : > { %s214_s7 = sand.u32 (!%p209_p3), 1, %s696_s19  }
  0x29   : > { %212 = sbr.rel (%p209_p3) target bundleno = 322 (0x142), region = 32  ;;  %s545_s9 = sshll.u32 (!%p209_p3), %s214_s7, 5 }
  0x2a   : > { %s215_s13 = scalar_lea.sflag (!%p209_p3), [#allocation3], %s214_s7  ;;  %s218_s14 = scalar_lea.vmem (!%p209_p3), [#allocation2], %s545_s9 }
  0x30   : > { %687 = dma.done.wait (%p775_p7), %s215_s13, 512  }
  0x31   : > { %689 = vsyncadd (%p775_p7), %s215_s13, 4294966784  ;;  %v632_v0 = vld [vmem:[%s886_s1] sm:$0xff]   ;;  %v633_v1 = vld [vmem:[%s886_s1 + $0x8] sm:$0xff]   ;;  %p251_p7 = scmp.lt.s32.totalorder %s758_s22, 1 }
  0x32   : > { %571 = vmatprep.subr.bf16.mxu0 %v632_v0  ;;  %v634_v2 = vld [vmem:[%s886_s1 + $0x10] sm:$0xff]   ;;  %v635_v3 = vld [vmem:[%s886_s1 + $0x18] sm:$0xff]   ;;  %v263_v4 = vld [vmem:[%s218_s14] sm:$0xff] }
  0x33   : > { %572 = vmatpush3.bf16.msra.mxu0 %v632_v0  ;;  %v264_v5 = vld [vmem:[%s218_s14 + $0x8] sm:$0xff]  ;;  %v636_v7 = vld [vmem:[%s886_s1 + $0x20] sm:$0xff]   ;;  %v638_v9 = vld [vmem:[%s886_s1 + $0x30] sm:$0xff]   ;;  %s899_s22 = smov (!%p251_p7, %s758_s22), 1 }
  0x34   : > { %573 = vmatprep.subr.bf16.mxu0 %v633_v1  ;;  %v267_v6 = vpack.c.bf16 %v264_v5, %v263_v4  ;;  %v637_v8 = vld [vmem:[%s886_s1 + $0x28] sm:$0xff]   ;;  %v639_v10 = vld [vmem:[%s886_s1 + $0x38] sm:$0xff]   ;;  %v265_v11 = vld [vmem:[%s218_s14 + $0x10] sm:$0xff]  ;;  %s560_s13 = sshll.u32 %s899_s22, 5  ;;  %s258_s21 = scalar_lea.vmem %s889_s4, %s899_s22 }
  0x35   : > { %v266_v12 = vld [vmem:[%s218_s14 + $0x18] sm:$0xff]  ;;  %v548_v14 = vld [vmem:[%s887_s2] ss:$0 sm:$0xff]  ;;  %s255_s14 = scalar_lea.vmem %s888_s3, %s560_s13  ;;  %s261_s27 = scalar_lea.vmem %s890_s5, %s899_s22 }
  0x36   : > { %587 = vmatprep.mubr.bf16.mxu0 %v267_v6  ;;  %v268_v13 = vpack.c.bf16 %v266_v12, %v265_v11 }
  0x37   : > { %574 = vmatpush3.bf16.msra.mxu0 %v633_v1 }
  0x38   : > { %575 = vmatprep.subr.bf16.mxu0 %v634_v2 }
  0x3b   : > { %576 = vmatpush3.bf16.msra.mxu0 %v634_v2 }
  0x3c   : > { %577 = vmatprep.subr.bf16.mxu0 %v635_v3 }
  0x3f   : > { %578 = vmatpush3.bf16.msra.mxu0 %v635_v3 }
  0x40   : > { %579 = vmatprep.subr.bf16.mxu0 %v636_v7 }
  0x43   : > { %580 = vmatpush3.bf16.msra.mxu0 %v636_v7 }
  0x44   : > { %581 = vmatprep.subr.bf16.mxu0 %v637_v8 }
  0x47   : > { %582 = vmatpush3.bf16.msra.mxu0 %v637_v8 }
  0x48   : > { %583 = vmatprep.subr.bf16.mxu0 %v638_v9 }
  0x4b   : > { %584 = vmatpush3.bf16.msra.mxu0 %v638_v9 }
  0x4c   : > { %585 = vmatprep.subr.bf16.mxu0 %v639_v10 }
  0x4f   : > { %586 = vmatpush3.bf16.msra.mxu0 %v639_v10 }
  0x52   : > { %588 = vmatmul.mubr.bf16.vlgmr.msra.gmra.mrb[0].mxu0 %v268_v13 }
 0x125   : > { %v589_v15 = vpop.f32.mrb[0].mxu0 }
 0x126   : > { %v383_v16 = vadd.f32 %v589_v15, %v548_v14  ;;  %v374_v17 = vpop.f32.mrb[1].mxu0 }
 0x127   : > { %v375_v18 = vadd.f32 %v548_v14, %v374_v17  ;;  %v590_v19 = vpop.f32.mrb[2].mxu0 }
 0x128   : > { %v391_v20 = vmax.f32 %v383_v16, 0.0  ;;  %v386_v21 = vadd.f32 %v590_v19, %v548_v14  ;;  %v377_v22 = vpop.f32.mrb[3].mxu0 }
 0x129   : > { %v389_v23 = vmax.f32 %v375_v18, 0.0  ;;  %v378_v24 = vadd.f32 %v548_v14, %v377_v22 }
 0x12a   : > { %395 = vst [vmem:[%s255_s14 + $0x10] sm:$0xff] %v391_v20  ;;  %v392_v25 = vmax.f32 %v386_v21, 0.0  ;;  %v409_v30 = vmul.f32 %v391_v20, %v391_v20 }
 0x12b   : > { %393 = vst [vmem:[%s255_s14] sm:$0xff] %v389_v23  ;;  %v390_v26 = vmax.f32 %v378_v24, 0.0  ;;  %v407_v27 = vmul.f32 %v389_v23, %v389_v23 }
 0x12c   : > { %396 = vst [vmem:[%s255_s14 + $0x18] sm:$0xff] %v392_v25  ;;  %v410_v33 = vmul.f32 %v392_v25, %v392_v25 }
 0x12d   : > { %394 = vst [vmem:[%s255_s14 + $0x8] sm:$0xff] %v390_v26  ;;  %v397_v28 = vadd.f32 %v390_v26, %v389_v23  ;;  %v408_v29 = vmul.f32 %v390_v26, %v390_v26 }
 0x12f   : > { %v398_v31 = vadd.f32 %v397_v28, %v391_v20  ;;  %v411_v32 = vadd.f32 %v408_v29, %v407_v27 }
 0x131   : > { %v399_v34 = vadd.f32 %v398_v31, %v392_v25  ;;  %v412_v35 = vadd.f32 %v411_v32, %v409_v30 }
 0x133   : > { %v400_v36 = vrot.slane %v399_v34, 4  ;;  %v413_v37 = vadd.f32 %v412_v35, %v410_v33 }
 0x135   : > { %v401_v38 = vadd.f32 %v400_v36, %v399_v34  ;;  %v414_v39 = vrot.slane %v413_v37, 4 }
 0x137   : > { %v402_v40 = vrot.slane %v401_v38, 2  ;;  %v415_v41 = vadd.f32 %v414_v39, %v413_v37 }
 0x139   : > { %v403_v42 = vadd.f32 %v402_v40, %v401_v38  ;;  %v416_v43 = vrot.slane %v415_v41, 2 }
 0x13b   : > { %v404_v44 = vrot.slane %v403_v42, 1  ;;  %v417_v45 = vadd.f32 %v416_v43, %v415_v41 }
 0x13d   : > { %v405_v46 = vadd.f32 %v404_v44, %v403_v42  ;;  %v418_v47 = vrot.slane %v417_v45, 1 }
 0x13f   : > { %406 = vst [vmem:[%s258_s21] sm:$0x1] %v405_v46  ;;  %v419_v48 = vadd.f32 %v418_v47, %v417_v45 }
 0x141   : > { %420 = vst [vmem:[%s261_s27] sm:$0x1] %v419_v48 }
 0x142 PF: > { %p16_p8 = scmp.ge.s32.totalorder %s761_s23, 4   ;;  %s894_s18 = smov %s696_s19 }
 0x143   : > { %s895_s19 = smov %s700_s20  ;;  %s896_s20 = smov %s771_s26 }
 0x144   : > { %s897_s21 = smov %s761_s23  ;;  %18 = sbr.rel (!%p16_p8) target bundleno = 3 (0x3), region = 96 }
 0x14b   :  { %466 = vsyncpa [#allocation3], 1 }
 0x14c   :  { %468 = vsyncpa [#allocation3 + $0x1], 1 }

// kernel: bottleneck_forward.6
= control target key start
LH: loop header
LB: loop body
LE: loop exit
PB: predicated region body
PF: predicated region fallthrough
CT: control target
= control target key end

     0   :  { %s696_s24 = smov 0   ;;  %s761_s0 = inlined_call_operand.vmem [shape: f32[2,32,128], index: 0, kind: input, shape index: {}]   ;;  %s762_s1 = inlined_call_operand.vmem [shape: f32[1,128], index: 1, kind: input, shape index: {}]   ;;  %s763_s2 = inlined_call_operand.vmem [shape: f32[1,128], index: 2, kind: input, shape index: {}]   ;;  %s764_s3 = inlined_call_operand.vmem [shape: bf16[128,128], index: 3, kind: input, shape index: {}]   ;;  %s765_s4 = inlined_call_operand.vmem [shape: f32[1,128], index: 4, kind: input, shape index: {}]   ;;  %s766_s5 = inlined_call_operand.vmem [shape: f32[2,32,128], index: 5, kind: output, shape index: {0}]   ;;  %s767_s6 = inlined_call_operand.vmem [shape: f32[2,1,128], index: 6, kind: output, shape index: {1}]   ;;  %s768_s7 = inlined_call_operand.vmem [shape: f32[2,1,128], index: 7, kind: output, shape index: {2}]  }
   0x1 LB: > { %s578_s25 = sadd.s32 4294967295, %s654_s24   ;;  %p582_p0 = scmp.ge.s32.totalorder %s654_s24, 1  ;;  %s654_s24 = sphi %s696_s24, %s18_s24  }
   0x2   : > { %p242_p1 = scmp.lt.s32.totalorder %s654_s24, 3 }
   0x4   : > { %p243_p2 = pnand %p582_p0, %p242_p1 }
   0x5   : > { %v640_v0 = vld [vmem:[%s764_s3] sm:$0xff] (!%p243_p2)   ;;  %p280_p3 = scmp.lt.s32.totalorder (!%p243_p2), %s578_s25, 1  ;;  %v641_v1 = vld [vmem:[%s764_s3 + $0x8] sm:$0xff] (!%p243_p2)   ;;  %v642_v2 = vld [vmem:[%s764_s3 + $0x10] sm:$0xff] (!%p243_p2)  }
   0x6   : > { %246 = sbr.rel (%p243_p2) target bundleno = 276 (0x114), region = 40  ;;  %612 = vmatprep.subr.bf16.mxu0 (!%p243_p2), %v640_v0  ;;  %v643_v3 = vld [vmem:[%s764_s3 + $0x18] sm:$0xff] (!%p243_p2)   ;;  %v587_v6 = vld [vmem:[%s762_s1] ss:$0 sm:$0xff] (!%p243_p2)  ;;  %v645_v14 = vld [vmem:[%s764_s3 + $0x28] sm:$0xff] (!%p243_p2)  }
   0x7   : > { %613 = vmatpush3.bf16.msra.mxu0 (!%p243_p2), %v640_v0  ;;  %v588_v9 = vld [vmem:[%s763_s2] ss:$0 sm:$0xff] (!%p243_p2)  ;;  %v646_v17 = vld [vmem:[%s764_s3 + $0x30] sm:$0xff] (!%p243_p2)   ;;  %v647_v20 = vld [vmem:[%s764_s3 + $0x38] sm:$0xff] (!%p243_p2)  }
   0x8   : > { %614 = vmatprep.subr.bf16.mxu0 (!%p243_p2), %v641_v1  ;;  %v644_v12 = vld [vmem:[%s764_s3 + $0x20] sm:$0xff] (!%p243_p2)  }
   0x9   : > { %v589_v24 = vld [vmem:[%s765_s4] ss:$0 sm:$0xff] (!%p243_p2) }
   0xb   : > { %615 = vmatpush3.bf16.msra.mxu0 (!%p243_p2), %v641_v1 }
   0xc   : > { %616 = vmatprep.subr.bf16.mxu0 (!%p243_p2), %v642_v2 }
   0xd   : > { %s770_s25 = smov (!%p280_p3, %s578_s25), 1 }
   0xe   : > { %s600_s9 = sshll.u32 %s770_s25, 5  ;;  %s292_s13 = scalar_lea.vmem %s767_s6, %s770_s25 }
   0xf   : > { %s284_s12 = scalar_lea.vmem %s761_s0, %s600_s9  ;;  %617 = vmatpush3.bf16.msra.mxu0 %v642_v2  ;;  %s289_s11 = scalar_lea.vmem %s766_s5, %s600_s9 }
  0x10   : > { %v297_v4 = vld [vmem:[%s284_s12] sm:$0xff]  ;;  %v298_v5 = vld [vmem:[%s284_s12 + $0x8] sm:$0xff]  ;;  %618 = vmatprep.subr.bf16.mxu0 %v643_v3  ;;  %v299_v15 = vld [vmem:[%s284_s12 + $0x10] sm:$0xff]  ;;  %s295_s16 = scalar_lea.vmem %s768_s7, %s770_s25 }
  0x11   : > { %v308_v7 = vmul.f32 %v587_v6, %v297_v4  ;;  %v309_v8 = vmul.f32 %v587_v6, %v298_v5  ;;  %v300_v16 = vld [vmem:[%s284_s12 + $0x18] sm:$0xff]  ;;  %v310_v18 = vmul.f32 %v587_v6, %v299_v15 }
  0x12   : > { %v311_v19 = vmul.f32 %v587_v6, %v300_v16 }
  0x13   : > { %v319_v10 = vadd.f32 %v588_v9, %v308_v7  ;;  %v320_v11 = vadd.f32 %v588_v9, %v309_v8  ;;  %619 = vmatpush3.bf16.msra.mxu0 %v643_v3  ;;  %v321_v21 = vadd.f32 %v588_v9, %v310_v18 }
  0x14   : > { %620 = vmatprep.subr.bf16.mxu0 %v644_v12  ;;  %v322_v22 = vadd.f32 %v588_v9, %v311_v19 }
  0x15   : > { %v323_v13 = vpack.c.bf16 %v320_v11, %v319_v10 }
  0x16   : > { %v324_v23 = vpack.c.bf16 %v322_v22, %v321_v21 }
  0x17   : > { %628 = vmatprep.mubr.bf16.mxu0 %v323_v13  ;;  %621 = vmatpush3.bf16.msra.mxu0 %v644_v12 }
  0x18   : > { %622 = vmatprep.subr.bf16.mxu0 %v645_v14 }
  0x1b   : > { %623 = vmatpush3.bf16.msra.mxu0 %v645_v14 }
  0x1c   : > { %624 = vmatprep.subr.bf16.mxu0 %v646_v17 }
  0x1f   : > { %625 = vmatpush3.bf16.msra.mxu0 %v646_v17 }
  0x20   : > { %626 = vmatprep.subr.bf16.mxu0 %v647_v20 }
  0x23   : > { %627 = vmatpush3.bf16.msra.mxu0 %v647_v20 }
  0x26   : > { %629 = vmatmul.mubr.bf16.vlgmr.msra.gmra.mrb[0].mxu0 %v324_v23 }
  0xf9   : > { %v630_v25 = vpop.f32.mrb[0].mxu0 }
  0xfa   : > { %v439_v26 = vadd.f32 %v630_v25, %v589_v24  ;;  %v430_v27 = vpop.f32.mrb[1].mxu0 }
  0xfb   : > { %v431_v28 = vadd.f32 %v589_v24, %v430_v27  ;;  %v631_v29 = vpop.f32.mrb[2].mxu0 }
  0xfc   : > { %447 = vst [vmem:[%s289_s11 + $0x10] sm:$0xff] %v439_v26  ;;  %v442_v30 = vadd.f32 %v631_v29, %v589_v24  ;;  %v433_v31 = vpop.f32.mrb[3].mxu0  ;;  %v461_v36 = vmul.f32 %v439_v26, %v439_v26 }
  0xfd   : > { %445 = vst [vmem:[%s289_s11] sm:$0xff] %v431_v28  ;;  %v434_v32 = vadd.f32 %v589_v24, %v433_v31  ;;  %v459_v33 = vmul.f32 %v431_v28, %v431_v28 }
  0xfe   : > { %448 = vst [vmem:[%s289_s11 + $0x18] sm:$0xff] %v442_v30  ;;  %v462_v39 = vmul.f32 %v442_v30, %v442_v30 }
  0xff   : > { %446 = vst [vmem:[%s289_s11 + $0x8] sm:$0xff] %v434_v32  ;;  %v449_v34 = vadd.f32 %v434_v32, %v431_v28  ;;  %v460_v35 = vmul.f32 %v434_v32, %v434_v32 }
 0x101   : > { %v450_v37 = vadd.f32 %v449_v34, %v439_v26  ;;  %v463_v38 = vadd.f32 %v460_v35, %v459_v33 }
 0x103   : > { %v451_v40 = vadd.f32 %v450_v37, %v442_v30  ;;  %v464_v41 = vadd.f32 %v463_v38, %v461_v36 }
 0x105   : > { %v452_v42 = vrot.slane %v451_v40, 4  ;;  %v465_v43 = vadd.f32 %v464_v41, %v462_v39 }
 0x107   : > { %v453_v44 = vadd.f32 %v452_v42, %v451_v40  ;;  %v466_v45 = vrot.slane %v465_v43, 4 }
 0x109   : > { %v454_v46 = vrot.slane %v453_v44, 2  ;;  %v467_v47 = vadd.f32 %v466_v45, %v465_v43 }
 0x10b   : > { %v455_v48 = vadd.f32 %v454_v46, %v453_v44  ;;  %v468_v49 = vrot.slane %v467_v47, 2 }
 0x10d   : > { %v456_v50 = vrot.slane %v455_v48, 1  ;;  %v469_v51 = vadd.f32 %v468_v49, %v467_v47 }
 0x10f   : > { %v457_v52 = vadd.f32 %v456_v50, %v455_v48  ;;  %v470_v53 = vrot.slane %v469_v51, 1 }
 0x111   : > { %458 = vst [vmem:[%s292_s13] sm:$0x1] %v457_v52  ;;  %v471_v54 = vadd.f32 %v470_v53, %v469_v51 }
 0x113   : > { %472 = vst [vmem:[%s295_s16] sm:$0x1] %v471_v54 }
 0x114 PF: > { %s18_s24 = sadd.s32 1, %s654_s24  }
 0x115   : > { %p15_p4 = scmp.ge.s32.totalorder %s18_s24, 4  }
 0x117   :  { %17 = sbr.rel (!%p15_p4) target bundleno = 1 (0x1), region = 94 }

// kernel: bottleneck_forward.7
= control target key start
LH: loop header
LB: loop body
LE: loop exit
PB: predicated region body
PF: predicated region fallthrough
CT: control target
= control target key end

     0   :  { %13 = vsyncpa [#allocation3], 0  ;;  %s1160_s0 = inlined_call_operand.vmem [shape: f32[2,32,128], index: 0, kind: input, shape index: {}]   ;;  %s1161_s1 = inlined_call_operand.vmem [shape: f32[2,32,128], index: 1, kind: input, shape index: {}]   ;;  %s1162_s2 = inlined_call_operand.vmem [shape: f32[1,128], index: 2, kind: input, shape index: {}]   ;;  %s1163_s3 = inlined_call_operand.vmem [shape: f32[1,128], index: 3, kind: input, shape index: {}]   ;;  %s1164_s4 = inlined_call_operand.vmem [shape: bf16[128,128], index: 4, kind: input, shape index: {}]   ;;  %s1165_s5 = inlined_call_operand.vmem [shape: f32[1,128], index: 5, kind: input, shape index: {}]   ;;  %s1166_s6 = inlined_call_operand.vmem [shape: bf16[128,128], index: 6, kind: input, shape index: {}]   ;;  %s1167_s7 = inlined_call_operand.vmem [shape: f32[1,128], index: 7, kind: input, shape index: {}]   ;;  %s1168_s8 = inlined_call_operand.hbm [shape: f32[2,32,128], index: 8, kind: output, shape index: {}]  }
   0x1   :  { %15 = vsyncpa [#allocation3 + $0x1], 0  ;;  %s960_s27 = smov 0   ;;  %s962_s28 = smov 0  }
   0x2   :  { %s964_s29 = smov 0   ;;  %s966_s30 = smov 0  }
   0x3 LB: > { %s981_s9 = sadd.s32 4294967295, %s908_s30   ;;  %s689_s10 = sadd.s32 4294967294, %s908_s30   ;;  %s908_s30 = sphi %s966_s30, %s1174_s30   ;;  %s904_s29 = sphi %s964_s29, %s1173_s29   ;;  %s900_s28 = sphi %s962_s28, %s1172_s28   ;;  %s896_s27 = sphi %s960_s27, %s1171_s27  }
   0x4   : > { %s985_s11 = sadd.s32 1, %s908_s30   ;;  %s206_s12 = sadd.s32 1, %s904_s29 }
   0x5   : > { %s203_s13 = ssub.s32 %s908_s30, %s985_s11  ;;  %p216_p0 = scmp.ne.s32.totalorder %s904_s29, %s900_s28 }
   0x6   : > { %p204_p1 = scmp.eq.s32.totalorder %s203_s13, 0  ;;  %p217_p2 = scmp.eq.s32.totalorder %s981_s9, 1 }
   0x7   : > { %p222_p3 = scmp.ne.s32.totalorder %s900_s28, %s896_s27  ;;  %p223_p4 = scmp.eq.s32.totalorder %s689_s10, 1 }
   0x8   : > { %s996_s14 = scalar_select %p204_p1, %s904_s29, %s206_s12  }
   0x9   : > { %p998_p5 = por %p217_p2, %p216_p0  ;;  %p1002_p6 = por %p223_p4, %p222_p3 }
   0xa   : > { %p692_p7 = scmp.ge.s32.totalorder %s908_s30, 1  ;;  %p275_p8 = scmp.lt.s32.totalorder %s908_s30, 3 }
   0xc   : > { %p276_p9 = pnand %p692_p7, %p275_p8 }
   0xd   : > { %v826_v0 = vld [vmem:[%s1164_s4] sm:$0xff] (!%p276_p9)   ;;  %v910_v1 = vmov (!%p276_p9), 0.0   ;;  %v827_v2 = vld [vmem:[%s1164_s4 + $0x8] sm:$0xff] (!%p276_p9)   ;;  %vm911_vm0 = vmmov (!%p276_p9), 0   ;;  %p314_p10 = scmp.lt.s32.totalorder (!%p276_p9), %s981_s9, 1  ;;  %v828_v3 = vld [vmem:[%s1164_s4 + $0x10] sm:$0xff] (!%p276_p9)  }
   0xe   : > { %279 = sbr.rel (%p276_p9) target bundleno = 532 (0x214), region = 52  ;;  %743 = vmatprep.subr.bf16.mxu0 (!%p276_p9), %v910_v1  ;;  %763 = vmatprep.subr.bf16.mxu1 (!%p276_p9), %v910_v1  ;;  %v698_v8 = vld [vmem:[%s1162_s2] ss:$0 sm:$0xff] (!%p276_p9)  ;;  %v829_v10 = vld [vmem:[%s1164_s4 + $0x18] sm:$0xff] (!%p276_p9)   ;;  %v835_v28 = vld [vmem:[%s1166_s6 + $0x8] sm:$0xff] (!%p276_p9)   ;;  %s311_s26 = sand.u32 (!%p276_p9), 1, %s900_s28  }
   0xf   : > { %744 = vmatpush3.bf16.msra.mxu0 (!%p276_p9), %v826_v0  ;;  %759 = vmatprep.mubr.msk.bf16.mxu0 (!%p276_p9), %vm911_vm0, %v910_v1  ;;  %v699_v9 = vld [vmem:[%s1163_s3] ss:$0 sm:$0xff] (!%p276_p9)  ;;  %v831_v31 = vld [vmem:[%s1164_s4 + $0x28] sm:$0xff] (!%p276_p9)   ;;  %v836_v33 = vld [vmem:[%s1166_s6 + $0x10] sm:$0xff] (!%p276_p9)   ;;  %s724_s12 = sshll.u32 (!%p276_p9), %s981_s9, 9  ;;  %s912_s22 = smov (!%p276_p9), [#allocation2]  }
  0x10   : > { %745 = vmatprep.subr.bf16.mxu0 (!%p276_p9), %v910_v1  ;;  %779 = vmatprep.mubr.msk.bf16.mxu1 (!%p276_p9), %vm911_vm0, %v910_v1  ;;  %v834_v22 = vld [vmem:[%s1166_s6] sm:$0xff] (!%p276_p9)   ;;  %v832_v35 = vld [vmem:[%s1164_s4 + $0x30] sm:$0xff] (!%p276_p9)   ;;  %v837_v37 = vld [vmem:[%s1166_s6 + $0x18] sm:$0xff] (!%p276_p9)   ;;  %s1111_s20 = scalar_lea.hbm (!%p276_p9), %s1168_s8, %s724_s12  ;;  %s850_s23 = sshll.u32 (!%p276_p9), %s912_s22, 4  ;;  %s851_s23 = int_to_ptr.vmem [resolvable:$false] %s850_s23 }
  0x11   : > { %v830_v24 = vld [vmem:[%s1164_s4 + $0x20] sm:$0xff] (!%p276_p9)   ;;  %764 = vmatpush3.bf16.msra.mxu1 (!%p276_p9), %v834_v22  ;;  %v833_v39 = vld [vmem:[%s1164_s4 + $0x38] sm:$0xff] (!%p276_p9)   ;;  %v839_v44 = vld [vmem:[%s1166_s6 + $0x28] sm:$0xff] (!%p276_p9)  }
  0x12   : > { %765 = vmatprep.subr.bf16.mxu1 (!%p276_p9), %v910_v1  ;;  %v838_v41 = vld [vmem:[%s1166_s6 + $0x20] sm:$0xff] (!%p276_p9)   ;;  %v840_v48 = vld [vmem:[%s1166_s6 + $0x30] sm:$0xff] (!%p276_p9)   ;;  %v841_v49 = vld [vmem:[%s1166_s6 + $0x38] sm:$0xff] (!%p276_p9)  }
  0x13   : > { %746 = vmatpush3.bf16.msra.mxu0 (!%p276_p9), %v827_v2  ;;  %v387_v50 = vld [vmem:[%s1165_s5] sm:$0x1] (!%p276_p9) }
  0x14   : > { %747 = vmatprep.subr.bf16.mxu0 (!%p276_p9), %v910_v1  ;;  %v494_v58 = vld [vmem:[%s1167_s7] sm:$0x1] (!%p276_p9) }
  0x15   : > { %s315_s21 = scalar_select %p314_p10, %s981_s9, 1  ;;  %766 = vmatpush3.bf16.msra.mxu1 %v835_v28 }
  0x16   : > { %767 = vmatprep.subr.bf16.mxu1 %v910_v1  ;;  %s1119_s9 = scalar_lea.sflag [#allocation3], %s311_s26 }
  0x17   : > { %s722_s24 = sshll.u32 %s315_s21, 5  ;;  %748 = vmatpush3.bf16.msra.mxu0 %v828_v3  ;;  %v589_v3 = vlaneseq }
  0x18   : > { %s318_s10 = scalar_lea.vmem %s1160_s0, %s722_s24  ;;  %s323_s17 = scalar_lea.vmem %s1161_s1, %s722_s24  ;;  %749 = vmatprep.subr.bf16.mxu0 %v910_v1 }
  0x19   : > { %v325_v4 = vld [vmem:[%s318_s10] sm:$0xff]  ;;  %v326_v5 = vld [vmem:[%s318_s10 + $0x8] sm:$0xff]  ;;  %v327_v6 = vld [vmem:[%s318_s10 + $0x10] sm:$0xff]  ;;  %768 = vmatpush3.bf16.msra.mxu1 %v836_v33  ;;  %s852_s24 = scalar_lea.vmem %s851_s23, 1024 }
  0x1a   : > { %v328_v7 = vld [vmem:[%s318_s10 + $0x18] sm:$0xff]  ;;  %v336_v11 = vmul.f32 %v698_v8, %v325_v4  ;;  %v337_v12 = vmul.f32 %v698_v8, %v326_v5  ;;  %v338_v13 = vmul.f32 %v698_v8, %v327_v6  ;;  %v351_v15 = vld [vmem:[%s323_s17] sm:$0xff]  ;;  %v352_v16 = vld [vmem:[%s323_s17 + $0x8] sm:$0xff]  ;;  %769 = vmatprep.subr.bf16.mxu1 %v910_v1  ;;  %v590_v4 = vshrl.u32 %v589_v3, 7  ;;  %s693_s10 = sshll.u32 %s311_s26, 5 }
  0x1b   : > { %v339_v14 = vmul.f32 %v698_v8, %v328_v7  ;;  %v353_v17 = vld [vmem:[%s323_s17 + $0x10] sm:$0xff]  ;;  %v354_v23 = vld [vmem:[%s323_s17 + $0x18] sm:$0xff]  ;;  %750 = vmatpush3.bf16.msra.mxu0 %v829_v10  ;;  %s313_s13 = scalar_lea.vmem [#allocation2], %s693_s10 }
  0x1c   : > { %v347_v18 = vadd.f32 %v699_v9, %v336_v11  ;;  %v348_v19 = vadd.f32 %v699_v9, %v337_v12  ;;  %v349_v20 = vadd.f32 %v699_v9, %v338_v13  ;;  %751 = vmatprep.subr.bf16.mxu0 %v910_v1  ;;  %v591_v5 = vsub.s32 0, %v590_v4  ;;  %s615_s17 = sshll.u32 %s313_s13, 4  ;;  %s1113_s17 = int_to_ptr.vmem [resolvable:$true] %s615_s17 }
  0x1d   : > { %v350_v21 = vadd.f32 %v699_v9, %v339_v14  ;;  %770 = vmatpush3.bf16.msra.mxu1 %v837_v37  ;;  %s846_s21 = scalar_lea.vmem %s1113_s17, 512  ;;  %p853_p0 = scmp.lt.s32.totalorder %s1113_s17, %s851_s23 }
  0x1e   : > { %v1047_v25 = vadd.f32 %v351_v15, %v347_v18  ;;  %v1049_v26 = vadd.f32 %v352_v16, %v348_v19  ;;  %v1051_v27 = vadd.f32 %v353_v17, %v349_v20  ;;  %771 = vmatprep.subr.bf16.mxu1 %v910_v1  ;;  %p847_p11 = scmp.ne.s32.totalorder %s1113_s17, %s846_s21  ;;  %p854_p1 = scmp.lt.s32.totalorder %s852_s24, %s846_s21 }
  0x1f   : > { %v1057_v29 = vadd.f32 %v354_v23, %v350_v21  ;;  %752 = vmatpush3.bf16.msra.mxu0 %v830_v24 }
  0x20   : > { %v359_v30 = vadd.f32 %v1049_v26, %v1047_v25  ;;  %753 = vmatprep.subr.bf16.mxu0 %v910_v1  ;;  %p848_p12 = pnand %p847_p11, %p998_p5  ;;  %p855_p2 = por %p854_p1, %p853_p0 }
  0x21   : > { %772 = vmatpush3.bf16.msra.mxu1 %v838_v41 }
  0x22   : > { %v360_v32 = vadd.f32 %v359_v30, %v1051_v27  ;;  %773 = vmatprep.subr.bf16.mxu1 %v910_v1  ;;  %p849_p13 = pneg %p848_p12 }
  0x23   : > { %754 = vmatpush3.bf16.msra.mxu0 %v831_v31 }
  0x24   : > { %v361_v34 = vadd.f32 %v360_v32, %v1057_v29  ;;  %755 = vmatprep.subr.bf16.mxu0 %v910_v1  ;;  %p856_p3 = pnand %p855_p2, %p849_p13 }
  0x25   : > { %774 = vmatpush3.bf16.msra.mxu1 %v839_v44 }
  0x26   : > { %v362_v36 = vrot.slane %v361_v34, 4  ;;  %775 = vmatprep.subr.bf16.mxu1 %v910_v1 }
  0x27   : > { %756 = vmatpush3.bf16.msra.mxu0 %v832_v35 }
  0x28   : > { %v363_v38 = vadd.f32 %v362_v36, %v361_v34  ;;  %757 = vmatprep.subr.bf16.mxu0 %v910_v1 }
  0x29   : > { %776 = vmatpush3.bf16.msra.mxu1 %v840_v48 }
  0x2a   : > { %v364_v40 = vrot.slane %v363_v38, 2  ;;  %777 = vmatprep.subr.bf16.mxu1 %v910_v1 }
  0x2b   : > { %758 = vmatpush3.bf16.msra.mxu0 %v833_v39 }
  0x2c   : > { %v365_v42 = vadd.f32 %v364_v40, %v363_v38 }
  0x2d   : > { %778 = vmatpush3.bf16.msra.mxu1 %v841_v49 }
  0x2e   : > { %v366_v43 = vrot.slane %v365_v42, 1 }
  0x30   : > { %v367_v45 = vadd.f32 %v366_v43, %v365_v42 }
  0x32   : > { %v369_v46 = vmul.f32 0.03125, %v367_v45 }
  0x34   : > { %v370_v47 = vpack.c.bf16 %v369_v46, %v369_v46 }
  0x36   : > { %760 = vmatmul.mubr.bf16.vlgmr.msra.gmra.mrb[0].mxu0 %v370_v47 }
 0x109   : > { %v470_v51 = vpop.f32.mrb[0].mxu0 }
 0x10a   : > { %v471_v52 = vadd.f32 %v470_v51, %v387_v50  ;;  %v761_v53 = vpop.f32.mrb[1].mxu0 }
 0x10b   : > { %v473_v54 = vpop.f32.mrb[2].mxu0 }
 0x10c   : > { %v476_v55 = vmax.f32 %v471_v52, 0.0  ;;  %v762_v56 = vpop.f32.mrb[3].mxu0 }
 0x10e   : > { %v477_v57 = vpack.c.bf16 %v476_v55, %v476_v55 }
 0x110   : > { %780 = vmatmul.mubr.bf16.vlgmr.msra.gmra.mrb[0].mxu1 %v477_v57 }
 0x1e3   : > { %v577_v59 = vpop.f32.mrb[0].mxu1 }
 0x1e4   : > { %v578_v60 = vadd.f32 %v577_v59, %v494_v58  ;;  %v781_v61 = vpop.f32.mrb[1].mxu1 }
 0x1e5   : > { %v580_v62 = vpop.f32.mrb[2].mxu1 }
 0x1e6   : > { %v716_v63 = vmul.f32 -1.442695, %v578_v60  ;;  %v782_v0 = vpop.f32.mrb[3].mxu1 }
 0x1e8   : > { %842 = vpow2.f32 %v716_v63 }
 0x1f2   : > { %v843_v1 = vpop.eup %842 }
 0x1f3   : > { %v586_v2 = vadd.f32 1.0, %v843_v1 }
 0x1f5   : > { %844 = vrcp.f32 %v586_v2 }
 0x1ff   : > { %v845_v6 = vpop.eup %844 }
 0x200   : > { %v592_v7 = vrot.slane %v845_v6, %v591_v5 }
 0x202   : > { %v593_v8 = vmul.f32 %v592_v7, %v1047_v25  ;;  %v594_v9 = vmul.f32 %v592_v7, %v1049_v26  ;;  %v595_v10 = vmul.f32 %v592_v7, %v1051_v27  ;;  %v596_v11 = vmul.f32 %v592_v7, %v1057_v29 }
 0x204   : > { %597 = vst [vmem:[%s313_s13] sm:$0xff] %v593_v8  ;;  %598 = vst [vmem:[%s313_s13 + $0x8] sm:$0xff] %v594_v9 }
 0x205   : > { %599 = vst [vmem:[%s313_s13 + $0x10] sm:$0xff] %v595_v10  ;;  %600 = vst [vmem:[%s313_s13 + $0x18] sm:$0xff] %v596_v11 }
 0x206   : > { %859 = shalt.err (!%p856_p3)
}
 0x207   : > { %s860_s25 = scalar_lea.hbm %s1111_s20, 512  ;;  %s864_s12 = scalar_lea.hbm %s1168_s8, 1024 }
 0x208   : > { %p861_p4 = scmp.ne.s32.totalorder %s1111_s20, %s860_s25  ;;  %p865_p9 = scmp.lt.u32.totalorder %s1111_s20, %s1168_s8 }
 0x209   : > { %p866_p10 = scmp.lt.u32.totalorder %s864_s12, %s860_s25  ;;  %p868_p12 = scmp.lt.u32.totalorder %s860_s25, %s1111_s20 }
 0x20a   : > { %p862_p7 = pnand %p861_p4, %p998_p5 }
 0x20b   : > { %p867_p11 = por %p866_p10, %p865_p9 }
 0x20c   : > { %p863_p8 = pneg %p862_p7 }
 0x20d   : > { %p869_p13 = por %p868_p12, %p867_p11 }
 0x20f   : > { %p870_p0 = pnand %p869_p13, %p863_p8 }
 0x211   : > { %873 = shalt.err (!%p870_p0)
}
 0x212   : > { %s913_s19 = smov 128   ;;  %s914_s21 = smov 8  }
 0x213   : > { %783 = dma.vmem_to_hbm [thread:$0]  (%p998_p5), %s1113_s17, 512, %s1111_s20, %s1119_s9, %s913_s19, %s913_s19, %s914_s21  }
 0x214 PF: > { %p789_p1 = scmp.ge.s32.totalorder %s908_s30, 2  ;;  %s630_s22 = sand.u32 1, %s896_s27  }
 0x215   : > { %s631_s23 = scalar_lea.sflag [#allocation3], %s630_s22 }
 0x216   : > { %p786_p2 = pnand %p789_p1, %p1002_p6 }
 0x218   : > { %891 = dma.done.wait (!%p786_p2), %s631_s23, 512  }
 0x219   : > { %893 = vsyncadd (!%p786_p2), %s631_s23, 4294966784  ;;  %p18_p3 = scmp.ge.s32.totalorder %s985_s11, 4   ;;  %s1171_s27 = smov %s900_s28 }
 0x21a   : > { %s1172_s28 = smov %s904_s29  ;;  %s1173_s29 = smov %s996_s14 }
 0x21b   : > { %s1174_s30 = smov %s985_s11  ;;  %20 = sbr.rel (!%p18_p3) target bundleno = 3 (0x3), region = 90 }
 0x222   :  { %636 = vsyncpa [#allocation3], 1 }
 0x223   :  { %638 = vsyncpa [#allocation3 + $0x1], 1 }

// kernel: bottleneck_forward.5
= control target key start
LH: loop header
LB: loop body
LE: loop exit
PB: predicated region body
PF: predicated region fallthrough
CT: control target
= control target key end

     0   :  { %s996_s24 = smov 0   ;;  %s1127_s0 = inlined_call_operand.vmem [shape: f32[2,32,128], index: 0, kind: input, shape index: {}]   ;;  %s1128_s1 = inlined_call_operand.vmem [shape: f32[1,128], index: 1, kind: input, shape index: {}]   ;;  %s1129_s2 = inlined_call_operand.vmem [shape: f32[1,128], index: 2, kind: input, shape index: {}]   ;;  %s1130_s3 = inlined_call_operand.vmem [shape: bf16[384,128], index: 3, kind: input, shape index: {}]   ;;  %s1131_s4 = inlined_call_operand.vmem [shape: f32[1,128], index: 4, kind: input, shape index: {}]   ;;  %s1132_s5 = inlined_call_operand.vmem [shape: f32[2,32,128], index: 5, kind: output, shape index: {0}]   ;;  %s1133_s6 = inlined_call_operand.vmem [shape: f32[2,1,128], index: 6, kind: output, shape index: {1}]   ;;  %s1134_s7 = inlined_call_operand.vmem [shape: f32[2,1,128], index: 7, kind: output, shape index: {2}]  }
   0x1 LB: > { %s812_s25 = sadd.s32 4294967295, %s953_s24   ;;  %p816_p0 = scmp.ge.s32.totalorder %s953_s24, 1  ;;  %s953_s24 = sphi %s996_s24, %s18_s24  }
   0x2   : > { %p242_p1 = scmp.lt.s32.totalorder %s953_s24, 3 }
   0x4   : > { %p243_p2 = pnand %p816_p0, %p242_p1 }
   0x5   : > { %v923_v0 = vld [vmem:[%s1130_s3 + $0x40] sm:$0xff] (!%p243_p2)   ;;  %v925_v2 = vld [vmem:[%s1130_s3 + $0x48] sm:$0xff] (!%p243_p2)   ;;  %v928_v5 = vld [vmem:[%s1130_s3 + $0x50] sm:$0xff] (!%p243_p2)   ;;  %p280_p3 = scmp.lt.s32.totalorder (!%p243_p2), %s812_s25, 1  ;;  %vm327_vm0 = vcmask (!%p243_p2), 1041408   ;;  %vm344_vm1 = vcmask (!%p243_p2), 1045504  }
   0x6   : > { %246 = sbr.rel (%p243_p2) target bundleno = 286 (0x11e), region = 40  ;;  %v924_v1 = vld [vmem:[%s1130_s3] sm:$0xff] (!%p243_p2)   ;;  %856 = vmatprep.subr.bf16.mxu0 (!%p243_p2), %v923_v0  ;;  %v927_v4 = vld [vmem:[%s1130_s3 + $0x8] sm:$0xff] (!%p243_p2)   ;;  %v930_v7 = vld [vmem:[%s1130_s3 + $0x10] sm:$0xff] (!%p243_p2)   ;;  %vm358_vm3 = vcmask (!%p243_p2), 1043456   ;;  %vm955_vm4 = vmmov (!%p243_p2), 1  }
   0x7   : > { %857 = vmatpush3.bf16.msra.mxu0 (!%p243_p2), %v924_v1  ;;  %v926_v3 = vld [vmem:[%s1130_s3 + $0x80] sm:$0xff] (!%p243_p2)   ;;  %v929_v6 = vld [vmem:[%s1130_s3 + $0x88] sm:$0xff] (!%p243_p2)   ;;  %v931_v8 = vld [vmem:[%s1130_s3 + $0x58] sm:$0xff] (!%p243_p2)  }
   0x8   : > { %858 = vmatprep.subr.bf16.mxu0 (!%p243_p2), %v925_v2  ;;  %894 = vmatprep.subr.bf16.mxu1 (!%p243_p2), %v926_v3  ;;  %v932_v9 = vld [vmem:[%s1130_s3 + $0x90] sm:$0xff] (!%p243_p2)   ;;  %v933_v10 = vld [vmem:[%s1130_s3 + $0x18] sm:$0xff] (!%p243_p2)   ;;  %v934_v11 = vld [vmem:[%s1130_s3 + $0x60] sm:$0xff] (!%p243_p2)  }
   0x9   : > { %895 = vmatpush3.bf16.msra.mxu1 (!%p243_p2), %v926_v3  ;;  %v935_v12 = vld [vmem:[%s1130_s3 + $0x98] sm:$0xff] (!%p243_p2)   ;;  %v936_v13 = vld [vmem:[%s1130_s3 + $0x20] sm:$0xff] (!%p243_p2)   ;;  %v937_v15 = vld [vmem:[%s1130_s3 + $0x68] sm:$0xff] (!%p243_p2)  }
   0xa   : > { %896 = vmatprep.subr.bf16.mxu1 (!%p243_p2), %v929_v6  ;;  %v938_v14 = vld [vmem:[%s1130_s3 + $0xa0] sm:$0xff] (!%p243_p2)   ;;  %v939_v16 = vld [vmem:[%s1130_s3 + $0x28] sm:$0xff] (!%p243_p2)   ;;  %v940_v18 = vld [vmem:[%s1130_s3 + $0x70] sm:$0xff] (!%p243_p2)  }
   0xb   : > { %859 = vmatpush3.bf16.msra.mxu0 (!%p243_p2), %v927_v4  ;;  %v941_v17 = vld [vmem:[%s1130_s3 + $0xa8] sm:$0xff] (!%p243_p2)   ;;  %v942_v19 = vld [vmem:[%s1130_s3 + $0x30] sm:$0xff] (!%p243_p2)   ;;  %v943_v24 = vld [vmem:[%s1130_s3 + $0x78] sm:$0xff] (!%p243_p2)  }
   0xc   : > { %860 = vmatprep.subr.bf16.mxu0 (!%p243_p2), %v928_v5  ;;  %v944_v20 = vld [vmem:[%s1130_s3 + $0xb0] sm:$0xff] (!%p243_p2)   ;;  %v821_v25 = vld [vmem:[%s1128_s1] ss:$0 sm:$0xff] (!%p243_p2)  ;;  %v945_v31 = vld [vmem:[%s1130_s3 + $0x38] sm:$0xff] (!%p243_p2)  }
   0xd   : > { %897 = vmatpush3.bf16.msra.mxu1 %v929_v6  ;;  %s1136_s25 = smov (!%p280_p3, %s812_s25), 1  ;;  %v822_v26 = vld [vmem:[%s1129_s2] ss:$0 sm:$0xff]  ;;  %v946_v35 = vld [vmem:[%s1130_s3 + $0xb8] sm:$0xff]   ;;  %vm848_vm2 = vmneg %vm327_vm0 }
   0xe   : > { %898 = vmatprep.subr.bf16.mxu1 %v932_v9  ;;  %s854_s14 = sshll.u32 %s1136_s25, 5  ;;  %vm849_vm5 = vmpackc.low %vm955_vm4, %vm848_vm2  ;;  %s292_s26 = scalar_lea.vmem %s1133_s6, %s1136_s25 }
   0xf   : > { %861 = vmatpush3.bf16.msra.mxu0 %v930_v7  ;;  %s284_s23 = scalar_lea.vmem %s1127_s0, %s854_s14  ;;  %s289_s22 = scalar_lea.vmem %s1132_s5, %s854_s14 }
  0x10   : > { %862 = vmatprep.subr.bf16.mxu0 %v931_v8  ;;  %v297_v21 = vld [vmem:[%s284_s23] sm:$0xff]  ;;  %v298_v22 = vld [vmem:[%s284_s23 + $0x8] sm:$0xff]  ;;  %v299_v23 = vld [vmem:[%s284_s23 + $0x10] sm:$0xff]  ;;  %s295_s29 = scalar_lea.vmem %s1134_s7, %s1136_s25 }
  0x11   : > { %899 = vmatpush3.bf16.msra.mxu1 %v932_v9  ;;  %v308_v27 = vmul.f32 %v821_v25, %v297_v21  ;;  %v309_v28 = vmul.f32 %v821_v25, %v298_v22  ;;  %v310_v29 = vmul.f32 %v821_v25, %v299_v23  ;;  %v300_v30 = vld [vmem:[%s284_s23 + $0x18] sm:$0xff]  ;;  %v823_v9 = vld [vmem:[%s1131_s4] ss:$0 sm:$0xff] }
  0x12   : > { %900 = vmatprep.subr.bf16.mxu1 %v935_v12  ;;  %v311_v36 = vmul.f32 %v821_v25, %v300_v30 }
  0x13   : > { %863 = vmatpush3.bf16.msra.mxu0 %v933_v10  ;;  %v319_v32 = vadd.f32 %v822_v26, %v308_v27  ;;  %v320_v33 = vadd.f32 %v822_v26, %v309_v28  ;;  %v321_v34 = vadd.f32 %v822_v26, %v310_v29 }
  0x14   : > { %864 = vmatprep.subr.bf16.mxu0 %v934_v11  ;;  %v322_v40 = vadd.f32 %v822_v26, %v311_v36 }
  0x15   : > { %901 = vmatpush3.bf16.msra.mxu1 %v935_v12  ;;  %v328_v37 = vrot.slane %v319_v32, 6  ;;  %v329_v38 = vrot.slane %v320_v33, 6  ;;  %v331_v39 = vrot.slane %v321_v34, 6 }
  0x16   : > { %902 = vmatprep.subr.bf16.mxu1 %v938_v14  ;;  %v333_v50 = vrot.slane %v322_v40, 6 }
  0x17   : > { %865 = vmatpush3.bf16.msra.mxu0 %v936_v13  ;;  %v330_v41 = vsel %vm327_vm0, %v328_v37, %v329_v38  ;;  %v332_v42 = vsel %vm327_vm0, %v329_v38, %v331_v39  ;;  %v340_v43 = vsel %vm327_vm0, 0.0, %v328_v37 }
  0x18   : > { %866 = vmatprep.subr.bf16.mxu0 %v937_v15  ;;  %v345_v44 = vrot.slane %v340_v43, 2  ;;  %v346_v45 = vrot.slane %v330_v41, 2  ;;  %v348_v46 = vrot.slane %v332_v42, 2  ;;  %v359_v47 = vrot.slane %v340_v43, 4 }
  0x19   : > { %903 = vmatpush3.bf16.msra.mxu1 %v938_v14  ;;  %v360_v48 = vrot.slane %v330_v41, 4  ;;  %v362_v49 = vrot.slane %v332_v42, 4  ;;  %v850_v53 = vpack.c.bf16 %v330_v41, %v328_v37  ;;  %v334_v57 = vsel %vm327_vm0, %v331_v39, %v333_v50 }
  0x1a   : > { %904 = vmatprep.subr.bf16.mxu1 %v941_v17  ;;  %v347_v51 = vsel %vm344_vm1, %v345_v44, %v346_v45  ;;  %v349_v52 = vsel %vm344_vm1, %v346_v45, %v348_v46  ;;  %v341_v59 = vsel %vm327_vm0, %v333_v50, 0.0  ;;  %v364_v60 = vrot.slane %v334_v57, 4 }
  0x1b   : > { %867 = vmatpush3.bf16.msra.mxu0 %v939_v16  ;;  %v373_v54 = vpack.c.bf16 %v349_v52, %v347_v51  ;;  %v361_v55 = vsel %vm358_vm3, %v359_v47, %v360_v48  ;;  %v363_v56 = vsel %vm358_vm3, %v360_v48, %v362_v49  ;;  %v350_v61 = vrot.slane %v334_v57, 2 }
  0x1c   : > { %868 = vmatprep.subr.bf16.mxu0 %v940_v18  ;;  %v374_v58 = vpack.c.bf16 %v363_v56, %v361_v55  ;;  %v366_v62 = vrot.slane %v341_v59, 4  ;;  %v352_v63 = vrot.slane %v341_v59, 2  ;;  %v365_v0 = vsel %vm358_vm3, %v362_v49, %v364_v60 }
  0x1d   : > { %905 = vmatpush3.bf16.msra.mxu1 %v941_v17  ;;  %609 = vmatprep.mubr.bf16.mxu0 %v373_v54  ;;  %v351_v1 = vsel %vm344_vm1, %v348_v46, %v350_v61  ;;  %v375_v6 = vpack.c.bf16 %v334_v57, %v332_v42 }
  0x1e   : > { %906 = vmatprep.subr.bf16.mxu1 %v944_v20  ;;  %910 = vmatprep.mubr.bf16.mxu1 %v374_v58  ;;  %v367_v2 = vsel %vm358_vm3, %v364_v60, %v366_v62  ;;  %v353_v3 = vsel %vm344_vm1, %v350_v61, %v352_v63 }
  0x1f   : > { %869 = vmatpush3.bf16.msra.mxu0 %v942_v19  ;;  %v377_v4 = vpack.c.bf16 %v367_v2, %v365_v0  ;;  %v376_v5 = vpack.c.bf16 %v353_v3, %v351_v1 }
  0x20   : > { %870 = vmatprep.subr.bf16.mxu0 %v943_v24 }
  0x21   : > { %907 = vmatpush3.bf16.msra.mxu1 %v944_v20 }
  0x22   : > { %908 = vmatprep.subr.bf16.mxu1 %v946_v35 }
  0x23   : > { %871 = vmatpush3.bf16.msra.mxu0 %v945_v31 }
  0x25   : > { %909 = vmatpush3.bf16.msra.mxu1 %v946_v35 }
  0x26   : > { %851 = vmatmul.mubr.msk.bf16.vlgmr.msra.gmra.mrb[0].mxu0 %vm849_vm5, %v850_v53 }
  0x27   : > { %617 = vmatprep.mubr.bf16.mxu0 %v376_v5 }
  0x28   : > { %911 = vmatmul.mubr.bf16.vlgmr.msra.gmra.mrb[0].mxu1 %v377_v4 }
  0x2e   : > { %618 = vmatmul.mubr.bf16.gmra.mrb[4].mxu0 %v375_v6 }
  0xf9   : > { %v872_v7 = vpop.f32.mrb[0].mxu0 }
  0xfa   : > { %v873_v8 = vpop.f32.mrb[1].mxu0 }
  0xfb   : > { %v874_v10 = vadd.f32 %v873_v8, %v872_v7  ;;  %v875_v11 = vpop.f32.mrb[2].mxu0  ;;  %v912_v14 = vpop.f32.mrb[0].mxu1 }
  0xfc   : > { %v876_v12 = vpop.f32.mrb[3].mxu0  ;;  %v660_v16 = vpop.f32.mrb[1].mxu1 }
  0xfd   : > { %v877_v13 = vadd.f32 %v876_v12, %v875_v11  ;;  %v612_v15 = vadd.f32 %v874_v10, %v823_v9  ;;  %v913_v18 = vpop.f32.mrb[2].mxu1 }
  0xfe   : > { %v663_v20 = vpop.f32.mrb[3].mxu1 }
  0xff   : > { %v661_v17 = vadd.f32 %v660_v16, %v612_v15  ;;  %v615_v19 = vadd.f32 %v877_v13, %v823_v9 }
 0x101   : > { %v675_v21 = vmax.f32 %v661_v17, 0.0  ;;  %v664_v22 = vadd.f32 %v663_v20, %v615_v19  ;;  %v878_v23 = vpop.f32.mrb[4].mxu0 }
 0x102   : > { %v879_v24 = vpop.f32.mrb[5].mxu0 }
 0x103   : > { %679 = vst [vmem:[%s289_s22] sm:$0xff] %v675_v21  ;;  %v676_v25 = vmax.f32 %v664_v22, 0.0  ;;  %v880_v26 = vadd.f32 %v879_v24, %v878_v23  ;;  %v881_v27 = vpop.f32.mrb[6].mxu0  ;;  %v693_v28 = vmul.f32 %v675_v21, %v675_v21 }
 0x104   : > { %v882_v29 = vpop.f32.mrb[7].mxu0 }
 0x105   : > { %680 = vst [vmem:[%s289_s22 + $0x8] sm:$0xff] %v676_v25  ;;  %v683_v30 = vadd.f32 %v676_v25, %v675_v21  ;;  %v694_v31 = vmul.f32 %v676_v25, %v676_v25  ;;  %v620_v32 = vadd.f32 %v880_v26, %v823_v9  ;;  %v883_v33 = vadd.f32 %v882_v29, %v881_v27 }
 0x107   : > { %v697_v34 = vadd.f32 %v694_v31, %v693_v28  ;;  %v669_v35 = vadd.f32 %v912_v14, %v620_v32  ;;  %v623_v36 = vadd.f32 %v883_v33, %v823_v9 }
 0x109   : > { %v677_v37 = vmax.f32 %v669_v35, 0.0  ;;  %v672_v38 = vadd.f32 %v913_v18, %v623_v36 }
 0x10b   : > { %681 = vst [vmem:[%s289_s22 + $0x10] sm:$0xff] %v677_v37  ;;  %v684_v39 = vadd.f32 %v683_v30, %v677_v37  ;;  %v695_v40 = vmul.f32 %v677_v37, %v677_v37  ;;  %v678_v41 = vmax.f32 %v672_v38, 0.0 }
 0x10d   : > { %v698_v42 = vadd.f32 %v697_v34, %v695_v40  ;;  %682 = vst [vmem:[%s289_s22 + $0x18] sm:$0xff] %v678_v41  ;;  %v685_v43 = vadd.f32 %v684_v39, %v678_v41  ;;  %v696_v44 = vmul.f32 %v678_v41, %v678_v41 }
 0x10f   : > { %v686_v45 = vrot.slane %v685_v43, 4  ;;  %v699_v46 = vadd.f32 %v698_v42, %v696_v44 }
 0x111   : > { %v687_v47 = vadd.f32 %v686_v45, %v685_v43  ;;  %v700_v48 = vrot.slane %v699_v46, 4 }
 0x113   : > { %v688_v49 = vrot.slane %v687_v47, 2  ;;  %v701_v50 = vadd.f32 %v700_v48, %v699_v46 }
 0x115   : > { %v689_v51 = vadd.f32 %v688_v49, %v687_v47  ;;  %v702_v52 = vrot.slane %v701_v50, 2 }
 0x117   : > { %v690_v53 = vrot.slane %v689_v51, 1  ;;  %v703_v54 = vadd.f32 %v702_v52, %v701_v50 }
 0x119   : > { %v691_v55 = vadd.f32 %v690_v53, %v689_v51  ;;  %v704_v56 = vrot.slane %v703_v54, 1 }
 0x11b   : > { %692 = vst [vmem:[%s292_s26] sm:$0x1] %v691_v55  ;;  %v705_v57 = vadd.f32 %v704_v56, %v703_v54 }
 0x11d   : > { %706 = vst [vmem:[%s295_s29] sm:$0x1] %v705_v57 }
 0x11e PF: > { %s18_s24 = sadd.s32 1, %s953_s24  }
 0x11f   : > { %p15_p4 = scmp.ge.s32.totalorder %s18_s24, 4  }
 0x121   :  { %17 = sbr.rel (!%p15_p4) target bundleno = 1 (0x1), region = 94 }

</bundles_post_ra>
